<compile_context>
chip_gen: v7x
topology: tpu7x:2x2x1
jax: 0.10.0
libtpu: 0.0.40
codegen_flags: <defaults>
</compile_context>

<pallas_src>
import jax
import jax.numpy as jnp
from jax.experimental import pallas as pl
from jax.experimental.pallas import tpu as pltpu


def _feature_similarity_kernel(a_ref, b_ref, bsq_ref, o_ref, asq_ref):
    """One (tm, tn) output tile of -||a_i - b_j||_2.

    a_ref:   (tm, Dp) row block (resident across the inner j sweep)
    b_ref:   (tn, Dp) col block
    bsq_ref: (1, tn)  col squared norms (precomputed, f32)
    o_ref:   (tm, tn) output tile
    asq_ref: (tm, 1)  VMEM scratch for the row squared norms
    """
    j = pl.program_id(1)

    # Row squared norms: computed once per row-block (A is unchanged over j).
    @pl.when(j == 0)
    def _():
        a32 = a_ref[...].astype(jnp.float32)
        asq_ref[...] = jnp.sum(a32 * a32, axis=-1, keepdims=True)

    # Cross term on the MXU, contracted over D, f32 accumulation.
    ab = jax.lax.dot_general(
        a_ref[...], b_ref[...],
        dimension_numbers=(((1,), (1,)), ((), ())),
        preferred_element_type=jnp.float32,
    )  # (tm, tn) f32

    # ||a_i - b_j||^2 = ||a_i||^2 + ||b_j||^2 - 2 a_i.b_j   (clamped for sqrt).
    d2 = jnp.maximum(asq_ref[...] + bsq_ref[...] - 2.0 * ab, 0.0)
    o_ref[...] = (-jnp.sqrt(d2)).astype(o_ref.dtype)

    # Exact zeros on the diagonal (global i == j).  Only diagonal tiles pay the
    # iota/compare/select epilogue; local iota is sufficient since tm == tn.
    @pl.when(pl.program_id(0) == j)
    def _():
        tm, tn = o_ref.shape
        ii = jax.lax.broadcasted_iota(jnp.int32, (tm, tn), 0)
        jj = jax.lax.broadcasted_iota(jnp.int32, (tm, tn), 1)
        o_ref[...] = jnp.where(ii == jj, 0.0, o_ref[...]).astype(o_ref.dtype)


def _vmem_bytes(tile, d_pad, in_itemsize, out_itemsize):
    """Rough per-step VMEM footprint (double-buffered inputs/outputs)."""
    a_b = 2 * 2 * tile * d_pad * in_itemsize   # A + B blocks, double-buffered
    bsq = 2 * 8 * tile * 4                     # (1, tn) block, sublane-padded
    out = 2 * tile * tile * out_itemsize       # output tile, double-buffered
    scr = tile * 128 * 4                       # (tm, 1) scratch, lane-padded
    return a_b + bsq + out + scr


def feature_similarity(features, *, tile=256, cast_to_bf16=True):
    """Negated pairwise L2 distances, (N, D) -> (N, N)."""
    assert features.ndim == 2
    assert tile % 128 == 0 and tile >= 128
    N, D = features.shape
    out_dtype = features.dtype

    # bf16 MXU feed (native on all generations); accumulation stays f32.
    in_dtype = (jnp.bfloat16
                if (cast_to_bf16 and features.dtype == jnp.float32)
                else features.dtype)
    f = features.astype(in_dtype)

    # Pad D to a lane-dense / MXU-aligned multiple of 128 (zero padding is
    # inert for both the dot products and the squared norms).
    d_pad = max(128, pl.cdiv(D, 128) * 128)
    # Don't use a tile much larger than the (padded) problem.
    t = min(tile, max(128, pl.next_power_of_2(N)))

    in_isz = jnp.dtype(in_dtype).itemsize
    out_isz = jnp.dtype(out_dtype).itemsize

    # VMEM budget: stay well under v7x's 64 MiB physical (and v5e's 128 MiB
    # once the scoped limit is raised).  Shrink tiles if D is huge.
    # Note: for very large D (>= ~4K) a third "arbitrary" K grid axis with an
    # f32 accumulator scratch would bound per-step VMEM instead of shrinking.
    budget = 40 << 20
    while t > 128 and _vmem_bytes(t, d_pad, in_isz, out_isz) > budget:
        t = max(128, (t // 2) // 128 * 128)
    tm = tn = t
    vmem_limit = int(min(max(2 * _vmem_bytes(t, d_pad, in_isz, out_isz) + (1 << 20),
                             32 << 20),
                         48 << 20))

    n_pad = pl.cdiv(N, t) * t
    pad_n, pad_d = n_pad - N, d_pad - D
    if pad_n or pad_d:
        f = jnp.pad(f, ((0, pad_n), (0, pad_d)))

    # Column squared norms, computed once from the same (rounded) values the
    # kernel sees, so the Gram expansion is exact on those values.
    f32 = f.astype(jnp.float32)
    bsq = jnp.sum(f32 * f32, axis=-1).reshape(1, n_pad)

    n_i = n_pad // tm
    grid = (n_i, n_pad // tn)

    out = pl.pallas_call(
        _feature_similarity_kernel,
        out_shape=jax.ShapeDtypeStruct((n_pad, n_pad), out_dtype),
        grid_spec=pltpu.PrefetchScalarGridSpec(
            num_scalar_prefetch=0,
            grid=grid,
            in_specs=[
                pl.BlockSpec((tm, d_pad), lambda i, j: (i, 0)),   # A row block
                pl.BlockSpec((tn, d_pad), lambda i, j: (j, 0)),   # B col block
                pl.BlockSpec((1, tn), lambda i, j: (0, j)),       # ||b||^2
            ],
            out_specs=pl.BlockSpec((tm, tn), lambda i, j: (i, j)),
            scratch_shapes=[pltpu.VMEM((tm, 1), jnp.float32)],    # ||a||^2
        ),
        compiler_params=pltpu.CompilerParams(
            # j must run in order within each row-block (asq written at j == 0);
            # i stays parallel so v7x megacore can shard row-blocks.
            dimension_semantics=("parallel", "arbitrary"),
            vmem_limit_bytes=vmem_limit,
        ),
        cost_estimate=pl.CostEstimate(
            flops=2 * n_pad * n_pad * d_pad,
            transcendentals=n_pad * n_pad,
            bytes_accessed=(n_pad * d_pad * in_isz             # A, once per row-block
                            + n_i * n_pad * d_pad * in_isz     # B, re-streamed
                            + n_i * n_pad * 4                  # bsq, re-streamed
                            + n_pad * n_pad * out_isz),        # output
        ),
    )(f, f, bsq)

    if n_pad != N:
        out = out[:N, :N]
    return out


if __name__ == "__main__":
    key = jax.random.PRNGKey(0)
    # N not a tile multiple and D not a multiple of 128 -> exercises the N
    # padding/slicing and D zero-padding paths; the grid is 2x2 so both the
    # diagonal and off-diagonal tile code paths run.
    N, D = 320, 72
    features = jax.random.normal(key, (N, D), dtype=jnp.float32)

    out = jax.block_until_ready(feature_similarity(features))

    # Reference (pure JAX, mirrors the PyTorch broadcast/norm semantics).
    ref = -jnp.linalg.norm(
        features[:, None, :] - features[None, :, :], ord=2, axis=-1)

    assert out.shape == (N, N)
    # Diagonal is exact by construction.
    assert bool(jnp.all(jnp.diag(out) == 0.0))
    # Tolerance covers the bf16 MXU feed of the Gram expansion (inputs rounded
    # to bf16; distances here are O(10), expected error O(1e-2)).
    assert jnp.allclose(out, ref, atol=2e-2, rtol=2e-3), (
        "mismatch vs reference, max abs err = "
        + str(float(jnp.max(jnp.abs(out - ref)))))
    print("KERNEL_OK")
</pallas_src>

<mosaic_0001>
module attributes {stable_mosaic.version = 11 : i64} {
  func.func @_feature_similarity_kernel(%arg0: i32, %arg1: i32, %arg2: memref<256x128xbf16, #tpu.memory_space<vmem>>, %arg3: memref<256x128xbf16, #tpu.memory_space<vmem>>, %arg4: memref<1x256xf32, #tpu.memory_space<vmem>>, %arg5: memref<256x256xf32, #tpu.memory_space<vmem>>, %arg6: memref<256x1xf32, #tpu.memory_space<vmem>>) attributes {dimension_semantics = [#tpu.dimension_semantics<parallel>, #tpu.dimension_semantics<arbitrary>], iteration_bounds = array<i64: 2, 2>, scalar_prefetch = 0 : i64, scratch_operands = 1 : i64, tpu.core_type = #tpu.core_type<tc>, window_params = [{transform_indices = @transform_0, window_bounds = array<i64: 256, 128>}, {transform_indices = @transform_1, window_bounds = array<i64: 256, 128>}, {transform_indices = @transform_2, window_bounds = array<i64: 1, 256>}, {transform_indices = @transform_3, window_bounds = array<i64: 256, 256>}]} {
    %c0_i32 = arith.constant 0 : i32
    %0 = arith.cmpi eq, %arg1, %c0_i32 : i32
    %1 = arith.extui %0 : i1 to i32
    %c0_i32_0 = arith.constant 0 : i32
    %2 = arith.cmpi ne, %1, %c0_i32_0 : i32
    scf.if %2 {
      %c0_14 = arith.constant 0 : index
      %c0_15 = arith.constant 0 : index
      %23 = vector.load %arg2[%c0_14, %c0_15] : memref<256x128xbf16, #tpu.memory_space<vmem>>, vector<256x128xbf16>
      %24 = arith.extf %23 : vector<256x128xbf16> to vector<256x128xf32>
      %25 = arith.mulf %24, %24 : vector<256x128xf32>
      %cst_16 = arith.constant dense<0.000000e+00> : vector<256xf32>
      %26 = vector.multi_reduction <add>, %25, %cst_16 [1] : vector<256x128xf32> to vector<256xf32>
      %27 = vector.shape_cast %26 : vector<256xf32> to vector<256x1xf32>
      %c0_17 = arith.constant 0 : index
      %c0_18 = arith.constant 0 : index
      %28 = vector.load %arg6[%c0_17, %c0_18] : memref<256x1xf32, #tpu.memory_space<vmem>>, vector<256x1xf32>
      tpu.vector_store %arg6[%c0_17, %c0_18], %27 {strides = array<i32>} : memref<256x1xf32, #tpu.memory_space<vmem>>, vector<256x1xf32>,
    } else {
    }
    %c0 = arith.constant 0 : index
    %c0_1 = arith.constant 0 : index
    %3 = vector.load %arg2[%c0, %c0_1] : memref<256x128xbf16, #tpu.memory_space<vmem>>, vector<256x128xbf16>
    %c0_2 = arith.constant 0 : index
    %c0_3 = arith.constant 0 : index
    %4 = vector.load %arg3[%c0_2, %c0_3] : memref<256x128xbf16, #tpu.memory_space<vmem>>, vector<256x128xbf16>
    %cst = arith.constant dense<0.000000e+00> : vector<256x256xf32>
    %5 = tpu.matmul %3, %4, %cst {dimension_numbers = #tpu.dot_dimension_numbers<[1], [1], [0], [0], [0, 0, 1, 0], [], []>} : vector<256x128xbf16>, vector<256x128xbf16>, vector<256x256xf32> -> vector<256x256xf32>
    %c0_4 = arith.constant 0 : index
    %c0_5 = arith.constant 0 : index
    %6 = vector.load %arg6[%c0_4, %c0_5] : memref<256x1xf32, #tpu.memory_space<vmem>>, vector<256x1xf32>
    %c0_6 = arith.constant 0 : index
    %c0_7 = arith.constant 0 : index
    %7 = vector.load %arg4[%c0_6, %c0_7] : memref<1x256xf32, #tpu.memory_space<vmem>>, vector<1x256xf32>
    %8 = vector.broadcast %6 : vector<256x1xf32> to vector<256x256xf32>
    %9 = vector.broadcast %7 : vector<1x256xf32> to vector<256x256xf32>
    %10 = arith.addf %8, %9 : vector<256x256xf32>
    %cst_8 = arith.constant 2.000000e+00 : f32
    %11 = vector.broadcast %cst_8 : f32 to vector<256x256xf32>
    %12 = arith.mulf %11, %5 : vector<256x256xf32>
    %13 = arith.subf %10, %12 : vector<256x256xf32>
    %cst_9 = arith.constant 0.000000e+00 : f32
    %14 = vector.broadcast %cst_9 : f32 to vector<256x256xf32>
    %15 = arith.maximumf %13, %14 : vector<256x256xf32>
    %16 = math.sqrt %15 : vector<256x256xf32>
    %cst_10 = arith.constant 0.000000e+00 : f32
    %17 = vector.broadcast %cst_10 : f32 to vector<256x256xf32>
    %18 = arith.subf %17, %16 : vector<256x256xf32>
    %c0_11 = arith.constant 0 : index
    %c0_12 = arith.constant 0 : index
    %19 = vector.load %arg5[%c0_11, %c0_12] : memref<256x256xf32, #tpu.memory_space<vmem>>, vector<256x256xf32>
    tpu.vector_store %arg5[%c0_11, %c0_12], %18 {strides = array<i32>} : memref<256x256xf32, #tpu.memory_space<vmem>>, vector<256x256xf32>,
    %20 = arith.cmpi eq, %arg0, %arg1 : i32
    %21 = arith.extui %20 : i1 to i32
    %c0_i32_13 = arith.constant 0 : i32
    %22 = arith.cmpi ne, %21, %c0_i32_13 : i32
    scf.if %22 {
      %23 = tpu.iota {dimensions = array<i32: 0>} : vector<256x256xi32>
      %24 = tpu.iota {dimensions = array<i32: 1>} : vector<256x256xi32>
      %25 = arith.cmpi eq, %23, %24 : vector<256x256xi32>
      %c0_14 = arith.constant 0 : index
      %c0_15 = arith.constant 0 : index
      %26 = vector.load %arg5[%c0_14, %c0_15] : memref<256x256xf32, #tpu.memory_space<vmem>>, vector<256x256xf32>
      %cst_16 = arith.constant 0.000000e+00 : f32
      %27 = vector.broadcast %cst_16 : f32 to vector<256x256xf32>
      %28 = arith.select %25, %27, %26 : vector<256x256xi1>, vector<256x256xf32>
      %c0_17 = arith.constant 0 : index
      %c0_18 = arith.constant 0 : index
      %29 = vector.load %arg5[%c0_17, %c0_18] : memref<256x256xf32, #tpu.memory_space<vmem>>, vector<256x256xf32>
      tpu.vector_store %arg5[%c0_17, %c0_18], %28 {strides = array<i32>} : memref<256x256xf32, #tpu.memory_space<vmem>>, vector<256x256xf32>,
    } else {
    }
    return
  }
  func.func @transform_0(%arg0: i32, %arg1: i32) -> (i32, i32) {
    %c0_i32 = arith.constant 0 : i32
    %c0_i32_0 = arith.constant 0 : i32
    return %arg0, %c0_i32 : i32, i32
  }
  func.func @transform_1(%arg0: i32, %arg1: i32) -> (i32, i32) {
    %c0_i32 = arith.constant 0 : i32
    %c0_i32_0 = arith.constant 0 : i32
    return %arg1, %c0_i32 : i32, i32
  }
  func.func @transform_2(%arg0: i32, %arg1: i32) -> (i32, i32) {
    %c0_i32 = arith.constant 0 : i32
    %c0_i32_0 = arith.constant 0 : i32
    return %c0_i32, %arg1 : i32, i32
  }
  func.func @transform_3(%arg0: i32, %arg1: i32) -> (i32, i32) {
    %c0_i32 = arith.constant 0 : i32
    return %arg0, %arg1 : i32, i32
  }
}

</mosaic_0001>

<bundles_post_ra>
// kernel: tpu_custom_call.1
= control target key start
LH: loop header
LB: loop body
LE: loop exit
PB: predicated region body
PF: predicated region fallthrough
CT: control target
= control target key end

     0   :  { %s4873_s0 = inlined_call_operand.hbm [shape: bf16[512,128], index: 0, kind: input, shape index: {}]   ;;  %s4874_s1 = inlined_call_operand.hbm [shape: bf16[512,128], index: 1, kind: input, shape index: {}]   ;;  %s4875_s2 = inlined_call_operand.vmem [shape: f32[1,512], index: 2, kind: input, shape index: {}]   ;;  %s4876_s3 = inlined_call_operand.hbm [shape: f32[512,512], index: 3, kind: output, shape index: {}]  }
   0x1   :  { %4896 = sst [smem:[#allocation53_spill]] %s4873_s0 }
   0x2   :  { %4897 = sst [smem:[#allocation54_spill]] %s4876_s3 }
   0x3   :  { %8 = vsyncpa [#allocation4], 0 }
   0x4   :  { %10 = vsyncpa [#allocation4 + $0x1], 0 }
   0x5   :  { %11 = vsyncpa [#allocation7], 0 }
   0x6   :  { %13 = vsyncpa [#allocation7 + $0x1], 0 }
   0x7   :  { %14 = vsyncpa [#allocation5], 0 }
   0x8   :  { %16 = vsyncpa [#allocation5 + $0x1], 0  ;;  %s3123_s12 = smov 0   ;;  %s3125_s13 = smov 0  }
   0x9   :  { %s3127_s14 = smov 0   ;;  %s3129_s15 = smov 0  }
   0xa   :  { %s3131_s16 = smov 0   ;;  %s3133_s17 = smov 0  }
   0xb   :  { %s3135_s18 = smov 0   ;;  %s3137_s19 = smov 0  }
   0xc   :  { %s3139_s20 = smov 0   ;;  %s3141_s21 = smov 0  }
   0xd   :  { %s3143_s22 = smov 0   ;;  %s3145_s23 = smov 0  }
   0xe   :  { %s3147_s24 = smov 0   ;;  %s3149_s25 = smov 0  }
   0xf LB: > { %4898 = sst [smem:[#allocation12_spill]] %s3084_s23  ;;  %s2381_s26 = sadd.s32 4294967295, %s3092_s25   ;;  %s3092_s25 = sphi %s3149_s25, %s22_s25   ;;  %s3088_s24 = sphi %s3147_s24, %s5004_s24   ;;  %s3084_s23 = sphi %s3145_s23, %s5003_s23   ;;  %s3080_s22 = sphi %s3143_s22, %s5002_s22   ;;  %s3076_s21 = sphi %s3141_s21, %s5001_s21   ;;  %s3072_s20 = sphi %s3139_s20, %s5014_s20   ;;  %s3068_s19 = sphi %s3137_s19, %s5013_s19   ;;  %s3064_s18 = sphi %s3135_s18, %s5012_s18   ;;  %s3060_s17 = sphi %s3133_s17, %s5011_s17   ;;  %s3056_s16 = sphi %s3131_s16, %s5010_s16   ;;  %s3052_s15 = sphi %s3129_s15, %s5009_s15   ;;  %s3048_s14 = sphi %s3127_s14, %s5008_s14   ;;  %s3044_s13 = sphi %s3125_s13, %s5007_s13   ;;  %s3040_s12 = sphi %s3123_s12, %s5006_s12  }
  0x10   : > { %4899 = sst [smem:[#allocation13_spill]] %s3088_s24  ;;  %p48_p0 = scmp.ne.s32.totalorder %s3072_s20, %s3068_s19 }
  0x11   : > { %p4878_p1 = scmp.eq.s32.totalorder %s3092_s25, 0  ;;  %p54_p2 = scmp.ne.s32.totalorder %s3068_s19, %s3064_s18 }
  0x12   : > { %p3200_p3 = scmp.eq.s32.totalorder %s2381_s26, 0  ;;  %p4877_p6 = scmp.lt.s32.totalorder %s3092_s25, 4 }
  0x13   : > { %p50_p4 = por %p4878_p1, %p48_p0  ;;  %s158_s4 = sand.u32 1, %s3072_s20  }
  0x14   : > { %p3208_p5 = por %p3200_p3, %p54_p2  ;;  %s2437_s5 = sshll.u32 %s3088_s24, 11 }
  0x15   : > { %s2385_s6 = sshll.u32 %s158_s4, 7  ;;  %s4902_s0 = sld [smem:[#allocation53_spill]] }
  0x16   : > { %s4901_s30 = scalar_select %p3208_p5, 1, 0 }
  0x17   : > { %s162_s10 = scalar_lea.vmem [#allocation3], %s2385_s6  ;;  %p3222_p7 = pnand %p4877_p6, %p50_p4 }
  0x18   : > { %s169_s11 = sshll.u32 %s162_s10, 4  ;;  %s3228_s28 = scalar_lea.sflag [#allocation4], %s158_s4  ;;  %s3226_s11 = int_to_ptr.vmem [resolvable:$true] %s169_s11 }
  0x19   : > { %p2884_p9 = pneg %p3222_p7 }
  0x1b   : > { %s3218_s9 = scalar_lea.hbm %s4902_s0, %s2437_s5  ;;  %s2887_s8 = scalar_lea.hbm %s4902_s0, 4096 }
  0x1c   : > { %s2882_s7 = scalar_lea.hbm %s3218_s9, 2048  ;;  %p2888_p12 = scmp.lt.u32.totalorder %s3218_s9, %s4902_s0 }
  0x1d   : > { %p2883_p8 = scmp.ne.s32.totalorder %s3218_s9, %s2882_s7  ;;  %p2889_p13 = scmp.lt.u32.totalorder %s2887_s8, %s2882_s7 }
  0x1e   : > { %p2891_p2 = scmp.lt.u32.totalorder %s2882_s7, %s3218_s9 }
  0x1f   : > { %p2885_p10 = pnand %p2884_p9, %p2883_p8  ;;  %p2890_p0 = por %p2889_p13, %p2888_p12 }
  0x21   : > { %p2886_p11 = pneg %p2885_p10  ;;  %p2892_p4 = por %p2891_p2, %p2890_p0 }
  0x23   : > { %p2893_p6 = pnand %p2892_p4, %p2886_p11 }
  0x25   : > { %2896 = shalt.err (!%p2893_p6)
}
  0x26   : > { %s2897_s4 = scalar_lea.vmem %s3226_s11, 2048  ;;  %s3094_s5 = smov [#allocation3]  }
  0x27   : > { %p2898_p8 = scmp.ne.s32.totalorder %s3226_s11, %s2897_s4  ;;  %s2902_s6 = sshll.u32 %s3094_s5, 4  ;;  %s2903_s6 = int_to_ptr.vmem [resolvable:$false] %s2902_s6 }
  0x28   : > { %s2904_s27 = scalar_lea.vmem %s2903_s6, 4096  ;;  %p2905_p5 = scmp.lt.s32.totalorder %s3226_s11, %s2903_s6 }
  0x29   : > { %p2900_p10 = pnand %p2898_p8, %p2884_p9  ;;  %p2906_p12 = scmp.lt.s32.totalorder %s2904_s27, %s2897_s4 }
  0x2b   : > { %p2901_p1 = pneg %p2900_p10  ;;  %p2907_p13 = por %p2906_p12, %p2905_p5 }
  0x2d   : > { %p2908_p0 = pnand %p2907_p13, %p2901_p1 }
  0x2f   : > { %2911 = shalt.err (!%p2908_p0)
}
  0x30   : > { %s4880_s7 = smov 64   ;;  %s4881_s8 = smov 4  }
  0x31   : > { %2592 = dma.hbm_to_vmem [thread:$0]  (!%p3222_p7), %s3218_s9, 2048, %s3226_s11, %s3228_s28, %s4880_s7, %s4880_s7, %s4881_s8  }
  0x32   : > { %p2391_p1 = scmp.ge.s32.totalorder %s3092_s25, 1  ;;  %p206_p5 = scmp.lt.s32.totalorder %s3092_s25, 5 }
  0x33   : > { %p3263_p6 = scmp.eq.s32.totalorder %s2381_s26, 3  ;;  %s2382_s18 = sadd.s32 4294967294, %s3092_s25  }
  0x34   : > { %p3267_p9 = pnand %p2391_p1, %p206_p5  ;;  %s31_s5 = sadd.s32 1, %s3084_s23 }
  0x35   : > { %p32_p7 = scmp.ge.s32.totalorder %s31_s5, 2  ;;  %s67_s28 = sadd.s32 1, %s3060_s17 }
  0x36   : > { %p74_p11 = scmp.ne.s32.totalorder %s3060_s17, %s3056_s16  ;;  %p80_p2 = scmp.ne.s32.totalorder %s3056_s16, %s3052_s15 }
  0x37   : > { %s5016_s5 = smov (%p32_p7, %s31_s5), 0  ;;  %s4907_s26 = sadd.s32 1, %s3088_s24 }
  0x38   : > { %4906 = sst [smem:[#allocation14_spill]] %s5016_s5  ;;  %s5018_s26 = smov (!%p32_p7, %s4907_s26), %s3088_s24 }
  0x39   : > { %s64_s9 = ssub.s32 %s3084_s23, %s5016_s5  ;;  %s121_s11 = sadd.s32 1, %s3048_s14 }
  0x3a   : > { %p36_p4 = scmp.ge.s32.totalorder %s5018_s26, 2  ;;  %p65_p8 = scmp.eq.s32.totalorder %s64_s9, 0 }
  0x3b   : > { %p3288_p10 = por %p80_p2, %p3200_p3  ;;  %p131_p12 = scmp.ne.s32.totalorder %s3048_s14, %s3044_s13 }
  0x3c   : > { %s5020_s26 = smov (%p36_p4, %s5018_s26), 0  ;;  %p137_p1 = scmp.ne.s32.totalorder %s3044_s13, %s3040_s12 }
  0x3d   : > { %s4908_s15 = scalar_select %p3288_p10, 1, 0 }
  0x3e   : > { %4909 = sst [smem:[#allocation15_spill]] %s5020_s26  ;;  %s38_s27 = ssub.s32 %s3088_s24, %s5020_s26 }
  0x3f   : > { %s3297_s6 = scalar_select %p65_p8, %s3060_s17, %s67_s28  }
  0x40   : > { %p3303_p13 = por %p3263_p6, %p131_p12  ;;  %p39_p0 = scmp.eq.s32.totalorder %s38_s27, 0 }
  0x41   : > { %s118_s29 = sor.u32 %s64_s9, %s38_s27  ;;  %s4911_s8 = sadd.s32 1, %s3072_s20 }
  0x42   : > { %s4910_s7 = scalar_select %p3303_p13, 1, 0 }
  0x43   : > { %p119_p3 = scmp.eq.s32.totalorder %s118_s29, 0  ;;  %p138_p5 = scmp.eq.s32.totalorder %s2382_s18, 3 }
  0x44   : > { %s3312_s0 = scalar_select %p39_p0, %s3072_s20, %s4911_s8  }
  0x45   : > { %s3315_s5 = scalar_select %p119_p3, %s3048_s14, %s121_s11  }
  0x46   : > { %s179_s3 = sand.u32 1, %s3060_s17   ;;  %p4912_p7 = scmp.eq.s32.totalorder %s3092_s25, 0 }
  0x47   : > { %s2388_s10 = sshll.u32 %s179_s3, 7  ;;  %p3323_p6 = por %p138_p5, %p137_p1 }
  0x48   : > { %p76_p2 = por %p74_p11, %p4912_p7  ;;  %s2438_s26 = sshll.u32 %s3084_s23, 11 }
  0x49   : > { %s4913_s28 = scalar_select %p3323_p6, 1, 0 }
  0x4a   : > { %s183_s24 = scalar_lea.vmem [#allocation6], %s2388_s10  ;;  %s3331_s8 = scalar_lea.hbm %s4874_s1, %s2438_s26 }
  0x4b   : > { %s190_s9 = sshll.u32 %s183_s24, 4  ;;  %p4914_p11 = scmp.lt.s32.totalorder %s3092_s25, 4  ;;  %s3333_s9 = int_to_ptr.vmem [resolvable:$true] %s190_s9 }
  0x4c   : > { %s3341_s11 = scalar_lea.sflag [#allocation7], %s179_s3  ;;  %s2912_s24 = scalar_lea.hbm %s3331_s8, 2048 }
  0x4d   : > { %p3337_p4 = pnand %p4914_p11, %p76_p2  ;;  %p2913_p8 = scmp.ne.s32.totalorder %s3331_s8, %s2912_s24 }
  0x4e   : > { %s2917_s27 = scalar_lea.hbm %s4874_s1, 4096  ;;  %p2918_p1 = scmp.lt.u32.totalorder %s3331_s8, %s4874_s1 }
  0x4f   : > { %p2914_p12 = pneg %p3337_p4  ;;  %p2919_p5 = scmp.lt.u32.totalorder %s2917_s27, %s2912_s24 }
  0x50   : > { %p2921_p2 = scmp.lt.u32.totalorder %s2912_s24, %s3331_s8 }
  0x51   : > { %p2915_p0 = pnand %p2914_p12, %p2913_p8  ;;  %p2920_p7 = por %p2919_p5, %p2918_p1 }
  0x53   : > { %p2916_p3 = pneg %p2915_p0  ;;  %p2922_p11 = por %p2921_p2, %p2920_p7 }
  0x55   : > { %p2923_p6 = pnand %p2922_p11, %p2916_p3 }
  0x57   : > { %2926 = shalt.err (!%p2923_p6)
}
  0x58   : > { %s2927_s3 = scalar_lea.vmem %s3333_s9, 2048  ;;  %s3097_s26 = smov [#allocation6]  }
  0x59   : > { %p2928_p8 = scmp.ne.s32.totalorder %s3333_s9, %s2927_s3  ;;  %s2932_s10 = sshll.u32 %s3097_s26, 4  ;;  %s2933_s10 = int_to_ptr.vmem [resolvable:$false] %s2932_s10 }
  0x5a   : > { %s2934_s23 = scalar_lea.vmem %s2933_s10, 4096  ;;  %p2935_p10 = scmp.lt.s32.totalorder %s3333_s9, %s2933_s10 }
  0x5b   : > { %p2930_p0 = pnand %p2928_p8, %p2914_p12  ;;  %p2936_p1 = scmp.lt.s32.totalorder %s2934_s23, %s2927_s3 }
  0x5d   : > { %p2931_p13 = pneg %p2930_p0  ;;  %p2937_p5 = por %p2936_p1, %p2935_p10 }
  0x5f   : > { %p2938_p7 = pnand %p2937_p5, %p2931_p13 }
  0x61   : > { %2941 = shalt.err (!%p2938_p7)
}
  0x62   : > { %s4916_s24 = smov 4   ;;  %s4917_s27 = smov 64  }
  0x63   : > { %2595 = dma.hbm_to_vmem [thread:$0]  (!%p3337_p4), %s3331_s8, 2048, %s3333_s9, %s3341_s11, %s4917_s27, %s4917_s27, %s4916_s24  }
  0x64   : > { %210 = sbr.rel (%p3267_p9) target bundleno = 845 (0x34d), region = 32 }
  0x6b   : > { %s212_s29 = sand.u32 1, %s3068_s19   ;;  %p4918_p10 = scmp.ne.s32.totalorder %s4901_s30, 0 }
  0x6c   : > { %s2392_s26 = sshll.u32 %s212_s29, 7  ;;  %s213_s3 = scalar_lea.sflag [#allocation4], %s212_s29 }
  0x6d   : > { %s3375_s10 = scalar_lea.vmem [#allocation3], %s2392_s26 }
  0x6e   : > { %3027 = dma.done.wait (%p4918_p10), %s213_s3, 2048  }
  0x6f   : > { %3029 = vsyncadd (%p4918_p10), %s213_s3, 4294965248  ;;  %s221_s18 = sand.u32 1, %s3056_s16   ;;  %p4919_p9 = scmp.ne.s32.totalorder %s4908_s15, 0 }
  0x70   : > { %s2393_s23 = sshll.u32 %s221_s18, 7  ;;  %s222_s9 = scalar_lea.sflag [#allocation7], %s221_s18 }
  0x71   : > { %s3382_s8 = scalar_lea.vmem [#allocation6], %s2393_s23 }
  0x72   : > { %3031 = dma.done.wait (%p4919_p9), %s222_s9, 2048  }
  0x73   : > { %3033 = vsyncadd (%p4919_p9), %s222_s9, 4294965248  ;;  %s254_s4 = sand.u32 1, %s3044_s13   ;;  %s3390_s11 = sshll.u32 %s3076_s21, 1 }
  0x74   : > { %s2394_s30 = sshll.u32 %s254_s4, 9  ;;  %p260_p13 = scmp.lt.s32.totalorder %s3390_s11, 3 }
  0x75   : > { %s3402_s15 = scalar_lea.vmem [#allocation8], %s2394_s30  ;;  %p2396_p6 = scmp.ne.s32.totalorder %s3076_s21, 0 }
  0x76   : > { %s3396_s24 = scalar_select %p260_p13, %s3390_s11, 3 }
  0x77   : > { %270 = sbr.rel (%p2396_p6) target bundleno = 327 (0x147), region = 44  ;;  %v2504_v0 = vld [vmem:[%s3375_s10 + $0x8] sm:$0xff] (!%p2396_p6)   ;;  %v2441_v1 = vld [vmem:[%s3375_s10] sm:$0xff] (!%p2396_p6)   ;;  %v2505_v6 = vld [vmem:[%s3375_s10 + $0x10] sm:$0xff] (!%p2396_p6)   ;;  %vm431_vm0 = vcmask (!%p2396_p6), 7168  }
  0x78   : > { %s262_s26 = scalar_lea.vmem %s4875_s2, %s3396_s24  ;;  %v2446_v2 = vunpack.c.l.bf16 (!%p2396_p6), %v2504_v0  ;;  %v2442_v3 = vunpack.c.l.bf16 (!%p2396_p6), %v2441_v1  ;;  %v2447_v4 = vunpack.c.h.bf16 (!%p2396_p6), %v2504_v0  ;;  %v2443_v5 = vunpack.c.h.bf16 (!%p2396_p6), %v2441_v1  ;;  %v2506_v13 = vld [vmem:[%s3375_s10 + $0x18] sm:$0xff] (!%p2396_p6)   ;;  %v2507_v18 = vld [vmem:[%s3375_s10 + $0x20] sm:$0xff] (!%p2396_p6)   ;;  %v2508_v23 = vld [vmem:[%s3375_s10 + $0x28] sm:$0xff] (!%p2396_p6)  }
  0x79   : > { %v2451_v11 = vunpack.c.h.bf16 (!%p2396_p6), %v2505_v6  ;;  %v2450_v12 = vunpack.c.l.bf16 (!%p2396_p6), %v2505_v6  ;;  %v2455_v16 = vunpack.c.h.bf16 (!%p2396_p6), %v2506_v13  ;;  %v2454_v17 = vunpack.c.l.bf16 (!%p2396_p6), %v2506_v13  ;;  %v2509_v28 = vld [vmem:[%s3375_s10 + $0x30] sm:$0xff] (!%p2396_p6)   ;;  %v2510_v33 = vld [vmem:[%s3375_s10 + $0x38] sm:$0xff] (!%p2396_p6)   ;;  %v2511_v38 = vld [vmem:[%s3375_s10 + $0x40] sm:$0xff] (!%p2396_p6)  }
  0x7a   : > { %v337_v7 = vmul.f32 (!%p2396_p6), %v2446_v2, %v2446_v2  ;;  %v335_v8 = vmul.f32 (!%p2396_p6), %v2442_v3, %v2442_v3  ;;  %v338_v9 = vmul.f32 (!%p2396_p6), %v2447_v4, %v2447_v4  ;;  %v336_v10 = vmul.f32 (!%p2396_p6), %v2443_v5, %v2443_v5  ;;  %v2512_v43 = vld [vmem:[%s3375_s10 + $0x48] sm:$0xff] (!%p2396_p6)   ;;  %v2513_v48 = vld [vmem:[%s3375_s10 + $0x50] sm:$0xff] (!%p2396_p6)   ;;  %v2514_v53 = vld [vmem:[%s3375_s10 + $0x58] sm:$0xff] (!%p2396_p6)  }
  0x7b   : > { %v340_v14 = vmul.f32 (!%p2396_p6), %v2451_v11, %v2451_v11  ;;  %v339_v15 = vmul.f32 (!%p2396_p6), %v2450_v12, %v2450_v12  ;;  %v342_v19 = vmul.f32 (!%p2396_p6), %v2455_v16, %v2455_v16  ;;  %v341_v20 = vmul.f32 (!%p2396_p6), %v2454_v17, %v2454_v17  ;;  %v2515_v58 = vld [vmem:[%s3375_s10 + $0x60] sm:$0xff] (!%p2396_p6)   ;;  %v2516_v63 = vld [vmem:[%s3375_s10 + $0x68] sm:$0xff] (!%p2396_p6)   ;;  %v2517_v4 = vld [vmem:[%s3375_s10 + $0x70] sm:$0xff] (!%p2396_p6)  }
  0x7c   : > { %371 = vadd.xlane.f32.xlu1 (!%p2396_p6), %v337_v7  ;;  %367 = vadd.xlane.f32.xlu0 (!%p2396_p6), %v335_v8  ;;  %v2459_v21 = vunpack.c.h.bf16 (!%p2396_p6), %v2507_v18  ;;  %v2458_v22 = vunpack.c.l.bf16 (!%p2396_p6), %v2507_v18  ;;  %v2463_v26 = vunpack.c.h.bf16 (!%p2396_p6), %v2508_v23  ;;  %v2462_v27 = vunpack.c.l.bf16 (!%p2396_p6), %v2508_v23 }
  0x7d   : > { %v2467_v31 = vunpack.c.h.bf16 (!%p2396_p6), %v2509_v28  ;;  %v2466_v32 = vunpack.c.l.bf16 (!%p2396_p6), %v2509_v28  ;;  %v2471_v36 = vunpack.c.h.bf16 (!%p2396_p6), %v2510_v33  ;;  %v2470_v37 = vunpack.c.l.bf16 (!%p2396_p6), %v2510_v33 }
  0x7e   : > { %v344_v24 = vmul.f32 %v2459_v21, %v2459_v21  ;;  %v343_v25 = vmul.f32 %v2458_v22, %v2458_v22  ;;  %v346_v29 = vmul.f32 %v2463_v26, %v2463_v26  ;;  %v345_v30 = vmul.f32 %v2462_v27, %v2462_v27 }
  0x7f   : > { %v348_v34 = vmul.f32 %v2467_v31, %v2467_v31  ;;  %v347_v35 = vmul.f32 %v2466_v32, %v2466_v32  ;;  %v350_v39 = vmul.f32 %v2471_v36, %v2471_v36  ;;  %v349_v40 = vmul.f32 %v2470_v37, %v2470_v37 }
  0x80   : > { %373 = vadd.xlane.f32.xlu1 %v338_v9  ;;  %369 = vadd.xlane.f32.xlu0 %v336_v10  ;;  %v2475_v41 = vunpack.c.h.bf16 %v2511_v38  ;;  %v2474_v42 = vunpack.c.l.bf16 %v2511_v38  ;;  %v2479_v46 = vunpack.c.h.bf16 %v2512_v43  ;;  %v2478_v47 = vunpack.c.l.bf16 %v2512_v43  ;;  %v2518_v9 = vld [vmem:[%s3375_s10 + $0x78] sm:$0xff]  }
  0x81   : > { %v2483_v51 = vunpack.c.h.bf16 %v2513_v48  ;;  %v2482_v52 = vunpack.c.l.bf16 %v2513_v48  ;;  %v2487_v56 = vunpack.c.h.bf16 %v2514_v53  ;;  %v2486_v57 = vunpack.c.l.bf16 %v2514_v53 }
  0x82   : > { %v352_v44 = vmul.f32 %v2475_v41, %v2475_v41  ;;  %v351_v45 = vmul.f32 %v2474_v42, %v2474_v42  ;;  %v354_v49 = vmul.f32 %v2479_v46, %v2479_v46  ;;  %v353_v50 = vmul.f32 %v2478_v47, %v2478_v47 }
  0x83   : > { %v356_v54 = vmul.f32 %v2483_v51, %v2483_v51  ;;  %v355_v55 = vmul.f32 %v2482_v52, %v2482_v52  ;;  %v358_v59 = vmul.f32 %v2487_v56, %v2487_v56  ;;  %v357_v60 = vmul.f32 %v2486_v57, %v2486_v57 }
  0x84   : > { %377 = vadd.xlane.f32.xlu1 %v340_v14  ;;  %375 = vadd.xlane.f32.xlu0 %v339_v15  ;;  %v2491_v61 = vunpack.c.h.bf16 %v2515_v58  ;;  %v2490_v62 = vunpack.c.l.bf16 %v2515_v58  ;;  %v2495_v2 = vunpack.c.h.bf16 %v2516_v63  ;;  %v2494_v3 = vunpack.c.l.bf16 %v2516_v63 }
  0x85   : > { %v2499_v7 = vunpack.c.h.bf16 %v2517_v4  ;;  %v2498_v8 = vunpack.c.l.bf16 %v2517_v4  ;;  %v2503_v12 = vunpack.c.h.bf16 %v2518_v9  ;;  %v2502_v13 = vunpack.c.l.bf16 %v2518_v9 }
  0x86   : > { %v360_v0 = vmul.f32 %v2491_v61, %v2491_v61  ;;  %v359_v1 = vmul.f32 %v2490_v62, %v2490_v62  ;;  %v362_v5 = vmul.f32 %v2495_v2, %v2495_v2  ;;  %v361_v6 = vmul.f32 %v2494_v3, %v2494_v3 }
  0x87   : > { %v364_v10 = vmul.f32 %v2499_v7, %v2499_v7  ;;  %v363_v11 = vmul.f32 %v2498_v8, %v2498_v8  ;;  %v366_v14 = vmul.f32 %v2503_v12, %v2503_v12  ;;  %v365_v15 = vmul.f32 %v2502_v13, %v2502_v13 }
  0x88   : > { %381 = vadd.xlane.f32.xlu1 %v342_v19  ;;  %379 = vadd.xlane.f32.xlu0 %v341_v20 }
  0x8c   : > { %385 = vadd.xlane.f32.xlu1 %v344_v24  ;;  %383 = vadd.xlane.f32.xlu0 %v343_v25 }
  0x90   : > { %389 = vadd.xlane.f32.xlu1 %v346_v29  ;;  %387 = vadd.xlane.f32.xlu0 %v345_v30 }
  0x94   : > { %393 = vadd.xlane.f32.xlu1 %v348_v34  ;;  %391 = vadd.xlane.f32.xlu0 %v347_v35 }
  0x98   : > { %397 = vadd.xlane.f32.xlu1 %v350_v39  ;;  %395 = vadd.xlane.f32.xlu0 %v349_v40 }
  0x9c   : > { %401 = vadd.xlane.f32.xlu1 %v352_v44  ;;  %399 = vadd.xlane.f32.xlu0 %v351_v45 }
  0xa0   : > { %405 = vadd.xlane.f32.xlu1 %v354_v49  ;;  %403 = vadd.xlane.f32.xlu0 %v353_v50 }
  0xa4   : > { %409 = vadd.xlane.f32.xlu1 %v356_v54  ;;  %407 = vadd.xlane.f32.xlu0 %v355_v55 }
  0xa8   : > { %413 = vadd.xlane.f32.xlu1 %v358_v59  ;;  %411 = vadd.xlane.f32.xlu0 %v357_v60 }
  0xac   : > { %417 = vadd.xlane.f32.xlu1 %v360_v0  ;;  %415 = vadd.xlane.f32.xlu0 %v359_v1 }
  0xb0   : > { %421 = vadd.xlane.f32.xlu1 %v362_v5  ;;  %419 = vadd.xlane.f32.xlu0 %v361_v6 }
  0xb4   : > { %425 = vadd.xlane.f32.xlu1 %v364_v10  ;;  %423 = vadd.xlane.f32.xlu0 %v363_v11 }
  0xb8   : > { %429 = vadd.xlane.f32.xlu1 %v366_v14  ;;  %427 = vadd.xlane.f32.xlu0 %v365_v15 }
 0x109   : > { %v372_v16 = vpop.xlane.xlu1 %371  ;;  %v368_v17 = vpop.xlane.xlu0 %367 }
 0x10a   : > { %434 = vst.msk [vmem:[#allocation2 + $0x10] sm:$0xff] %vm431_vm0, %v372_v16  ;;  %432 = vst.msk [vmem:[#allocation2] sm:$0xff] %vm431_vm0, %v368_v17 }
 0x10d   : > { %v374_v18 = vpop.xlane.xlu1 %373  ;;  %v370_v19 = vpop.xlane.xlu0 %369 }
 0x10e   : > { %435 = vst.msk [vmem:[#allocation2 + $0x18] sm:$0xff] %vm431_vm0, %v374_v18  ;;  %433 = vst.msk [vmem:[#allocation2 + $0x8] sm:$0xff] %vm431_vm0, %v370_v19 }
 0x111   : > { %v378_v20 = vpop.xlane.xlu1 %377  ;;  %v376_v21 = vpop.xlane.xlu0 %375 }
 0x112   : > { %437 = vst.msk [vmem:[#allocation2 + $0x28] sm:$0xff] %vm431_vm0, %v378_v20  ;;  %436 = vst.msk [vmem:[#allocation2 + $0x20] sm:$0xff] %vm431_vm0, %v376_v21 }
 0x115   : > { %v382_v22 = vpop.xlane.xlu1 %381  ;;  %v380_v23 = vpop.xlane.xlu0 %379 }
 0x116   : > { %439 = vst.msk [vmem:[#allocation2 + $0x38] sm:$0xff] %vm431_vm0, %v382_v22  ;;  %438 = vst.msk [vmem:[#allocation2 + $0x30] sm:$0xff] %vm431_vm0, %v380_v23 }
 0x119   : > { %v386_v24 = vpop.xlane.xlu1 %385  ;;  %v384_v25 = vpop.xlane.xlu0 %383 }
 0x11a   : > { %441 = vst.msk [vmem:[#allocation2 + $0x48] sm:$0xff] %vm431_vm0, %v386_v24  ;;  %440 = vst.msk [vmem:[#allocation2 + $0x40] sm:$0xff] %vm431_vm0, %v384_v25 }
 0x11d   : > { %v390_v26 = vpop.xlane.xlu1 %389  ;;  %v388_v27 = vpop.xlane.xlu0 %387 }
 0x11e   : > { %443 = vst.msk [vmem:[#allocation2 + $0x58] sm:$0xff] %vm431_vm0, %v390_v26  ;;  %442 = vst.msk [vmem:[#allocation2 + $0x50] sm:$0xff] %vm431_vm0, %v388_v27 }
 0x121   : > { %v394_v28 = vpop.xlane.xlu1 %393  ;;  %v392_v29 = vpop.xlane.xlu0 %391 }
 0x122   : > { %445 = vst.msk [vmem:[#allocation2 + $0x68] sm:$0xff] %vm431_vm0, %v394_v28  ;;  %444 = vst.msk [vmem:[#allocation2 + $0x60] sm:$0xff] %vm431_vm0, %v392_v29 }
 0x125   : > { %v398_v30 = vpop.xlane.xlu1 %397  ;;  %v396_v31 = vpop.xlane.xlu0 %395 }
 0x126   : > { %447 = vst.msk [vmem:[#allocation2 + $0x78] sm:$0xff] %vm431_vm0, %v398_v30  ;;  %446 = vst.msk [vmem:[#allocation2 + $0x70] sm:$0xff] %vm431_vm0, %v396_v31 }
 0x129   : > { %v402_v32 = vpop.xlane.xlu1 %401  ;;  %v400_v33 = vpop.xlane.xlu0 %399 }
 0x12a   : > { %449 = vst.msk [vmem:[#allocation2 + $0x88] sm:$0xff] %vm431_vm0, %v402_v32  ;;  %448 = vst.msk [vmem:[#allocation2 + $0x80] sm:$0xff] %vm431_vm0, %v400_v33 }
 0x12d   : > { %v406_v34 = vpop.xlane.xlu1 %405  ;;  %v404_v35 = vpop.xlane.xlu0 %403 }
 0x12e   : > { %451 = vst.msk [vmem:[#allocation2 + $0x98] sm:$0xff] %vm431_vm0, %v406_v34  ;;  %450 = vst.msk [vmem:[#allocation2 + $0x90] sm:$0xff] %vm431_vm0, %v404_v35 }
 0x131   : > { %v410_v36 = vpop.xlane.xlu1 %409  ;;  %v408_v37 = vpop.xlane.xlu0 %407 }
 0x132   : > { %453 = vst.msk [vmem:[#allocation2 + $0xa8] sm:$0xff] %vm431_vm0, %v410_v36  ;;  %452 = vst.msk [vmem:[#allocation2 + $0xa0] sm:$0xff] %vm431_vm0, %v408_v37 }
 0x135   : > { %v414_v38 = vpop.xlane.xlu1 %413  ;;  %v412_v39 = vpop.xlane.xlu0 %411 }
 0x136   : > { %455 = vst.msk [vmem:[#allocation2 + $0xb8] sm:$0xff] %vm431_vm0, %v414_v38  ;;  %454 = vst.msk [vmem:[#allocation2 + $0xb0] sm:$0xff] %vm431_vm0, %v412_v39 }
 0x139   : > { %v418_v40 = vpop.xlane.xlu1 %417  ;;  %v416_v41 = vpop.xlane.xlu0 %415 }
 0x13a   : > { %457 = vst.msk [vmem:[#allocation2 + $0xc8] sm:$0xff] %vm431_vm0, %v418_v40  ;;  %456 = vst.msk [vmem:[#allocation2 + $0xc0] sm:$0xff] %vm431_vm0, %v416_v41 }
 0x13d   : > { %v422_v42 = vpop.xlane.xlu1 %421  ;;  %v420_v43 = vpop.xlane.xlu0 %419 }
 0x13e   : > { %459 = vst.msk [vmem:[#allocation2 + $0xd8] sm:$0xff] %vm431_vm0, %v422_v42  ;;  %458 = vst.msk [vmem:[#allocation2 + $0xd0] sm:$0xff] %vm431_vm0, %v420_v43 }
 0x141   : > { %v426_v44 = vpop.xlane.xlu1 %425  ;;  %v424_v45 = vpop.xlane.xlu0 %423 }
 0x142   : > { %461 = vst.msk [vmem:[#allocation2 + $0xe8] sm:$0xff] %vm431_vm0, %v426_v44  ;;  %460 = vst.msk [vmem:[#allocation2 + $0xe0] sm:$0xff] %vm431_vm0, %v424_v45 }
 0x145   : > { %v430_v46 = vpop.xlane.xlu1 %429  ;;  %v428_v47 = vpop.xlane.xlu0 %427 }
 0x146   : > { %463 = vst.msk [vmem:[#allocation2 + $0xf8] sm:$0xff] %vm431_vm0, %v430_v46  ;;  %462 = vst.msk [vmem:[#allocation2 + $0xf0] sm:$0xff] %vm431_vm0, %v428_v47 }
 0x147 PF: > { %v2722_v48 = vld [vmem:[%s3382_s8 + $0x40] sm:$0xff]   ;;  %v3098_v50 = vmov 0   ;;  %v2724_v51 = vld [vmem:[%s3382_s8 + $0x48] sm:$0xff]   ;;  %v2726_v53 = vld [vmem:[%s3382_s8 + $0x50] sm:$0xff]   ;;  %p2429_p4 = scmp.ne.s32.totalorder %s3080_s22, %s3076_s21 }
 0x148   : > { %v2723_v49 = vld [vmem:[%s3382_s8] sm:$0xff]   ;;  %2721 = vset.pattern.permute.xlu1 %v3098_v50  ;;  %2720 = vset.pattern.permute.xlu0 %v3098_v50  ;;  %v2725_v52 = vld [vmem:[%s3382_s8 + $0x8] sm:$0xff]   ;;  %v2727_v54 = vld [vmem:[%s3382_s8 + $0x10] sm:$0xff]  }
 0x149   : > { %2519 = vmatprep.subr.bf16.mxu0 %v2722_v48  ;;  %2567 = vmatprep.subr.bf16.mxu1 %v2722_v48  ;;  %v2728_v55 = vld [vmem:[%s3382_s8 + $0x58] sm:$0xff]   ;;  %v3461_v56 = vld [vmem:[%s3375_s10] sm:$0xff]   ;;  %v915_v58 = vld [vmem:[#allocation2 + $0x10] sm:$0xff] }
 0x14a   : > { %2520 = vmatpush3.bf16.xpose.msra.mxu0 %v2723_v49  ;;  %2575 = vmatpush3.bf16.xpose.msra.mxu1 %v2723_v49  ;;  %v3464_v57 = vld [vmem:[%s3375_s10 + $0x40] sm:$0xff]   ;;  %v2729_v60 = vld [vmem:[%s3382_s8 + $0x18] sm:$0xff]   ;;  %v914_v63 = vld [vmem:[#allocation2 + $0x8] sm:$0xff]  ;;  %v4889_v49 = vlaneseq }
 0x14b   : > { %2521 = vmatprep.subr.bf16.mxu0 %v2724_v51  ;;  %2568 = vmatprep.subr.bf16.mxu1 %v2724_v51  ;;  %v913_v59 = vld [vmem:[#allocation2] sm:$0xff]  ;;  %v916_v62 = vld [vmem:[#allocation2 + $0x18] sm:$0xff]  ;;  %v918_v0 = vld [vmem:[#allocation2 + $0x28] sm:$0xff] }
 0x14c   : > { %2535 = vmatprep.mubr.bf16.mxu0 %v3461_v56  ;;  %2551 = vmatprep.mubr.bf16.mxu1 %v3464_v57  ;;  %v2730_v61 = vld [vmem:[%s3382_s8 + $0x60] sm:$0xff]   ;;  %v2732_v3 = vld [vmem:[%s3382_s8 + $0x68] sm:$0xff]   ;;  %v920_v4 = vld [vmem:[#allocation2 + $0x38] sm:$0xff] }
 0x14d   : > { %958 = vperm.xlu1 %2721, %v915_v58   ;;  %948 = vperm.xlu0 %2720, %v913_v59   ;;  %v917_v1 = vld [vmem:[#allocation2 + $0x20] sm:$0xff]  ;;  %v919_v5 = vld [vmem:[#allocation2 + $0x30] sm:$0xff]  ;;  %v922_v6 = vld [vmem:[#allocation2 + $0x48] sm:$0xff] }
 0x14e   : > { %v2731_v2 = vld [vmem:[%s3382_s8 + $0x20] sm:$0xff]   ;;  %v2733_v8 = vld [vmem:[%s3382_s8 + $0x28] sm:$0xff]   ;;  %v2734_v9 = vld [vmem:[%s3382_s8 + $0x70] sm:$0xff]  }
 0x14f   : > { %v921_v7 = vld [vmem:[#allocation2 + $0x40] sm:$0xff]  ;;  %v924_v10 = vld [vmem:[#allocation2 + $0x58] sm:$0xff]  ;;  %v923_v11 = vld [vmem:[#allocation2 + $0x50] sm:$0xff] }
 0x150   : > { %v926_v12 = vld [vmem:[#allocation2 + $0x68] sm:$0xff]  ;;  %v925_v13 = vld [vmem:[#allocation2 + $0x60] sm:$0xff]  ;;  %v2735_v14 = vld [vmem:[%s3382_s8 + $0x30] sm:$0xff]  }
 0x151   : > { %963 = vperm.xlu1 %2721, %v916_v62   ;;  %953 = vperm.xlu0 %2720, %v914_v63   ;;  %v2736_v15 = vld [vmem:[%s3382_s8 + $0x78] sm:$0xff]   ;;  %v927_v17 = vld [vmem:[#allocation2 + $0x70] sm:$0xff]  ;;  %v930_v18 = vld [vmem:[#allocation2 + $0x88] sm:$0xff] }
 0x152   : > { %2522 = vmatpush3.bf16.xpose.msra.mxu0 %v2725_v52  ;;  %2576 = vmatpush3.bf16.xpose.msra.mxu1 %v2725_v52  ;;  %v928_v16 = vld [vmem:[#allocation2 + $0x78] sm:$0xff]  ;;  %v929_v19 = vld [vmem:[#allocation2 + $0x80] sm:$0xff]  ;;  %v931_v22 = vld [vmem:[#allocation2 + $0x90] sm:$0xff]  ;;  %v3494_v52 = vshrl.u32 %v4889_v49, 7 }
 0x153   : > { %2523 = vmatprep.subr.bf16.mxu0 %v2726_v53  ;;  %2569 = vmatprep.subr.bf16.mxu1 %v2726_v53  ;;  %v2737_v20 = vld [vmem:[%s3382_s8 + $0x38] sm:$0xff]   ;;  %v934_v23 = vld [vmem:[#allocation2 + $0xa8] sm:$0xff]  ;;  %v933_v24 = vld [vmem:[#allocation2 + $0xa0] sm:$0xff] }
 0x154   : > { %v932_v21 = vld [vmem:[#allocation2 + $0x98] sm:$0xff]  ;;  %v2740_v25 = vld [vmem:[%s3375_s10 + $0x8] sm:$0xff]   ;;  %v935_v28 = vld [vmem:[#allocation2 + $0xb0] sm:$0xff]  ;;  %4920 = vst [vmem:[#allocation16_spill] sm:$0xff] %v3494_v52 }
 0x155   : > { %973 = vperm.xlu1 %2721, %v918_v0   ;;  %968 = vperm.xlu0 %2720, %v917_v1   ;;  %v2741_v26 = vld [vmem:[%s3375_s10 + $0x48] sm:$0xff]   ;;  %v936_v27 = vld [vmem:[#allocation2 + $0xb8] sm:$0xff]  ;;  %v937_v30 = vld [vmem:[#allocation2 + $0xc0] sm:$0xff] }
 0x156   : > { %v938_v29 = vld [vmem:[#allocation2 + $0xc8] sm:$0xff]  ;;  %v2742_v31 = vld [vmem:[%s3375_s10 + $0x10] sm:$0xff]   ;;  %v940_v33 = vld [vmem:[#allocation2 + $0xd8] sm:$0xff] }
 0x157   : > { %v2743_v32 = vld [vmem:[%s3375_s10 + $0x50] sm:$0xff]   ;;  %v942_v35 = vld [vmem:[#allocation2 + $0xe8] sm:$0xff]  ;;  %v941_v36 = vld [vmem:[#allocation2 + $0xe0] sm:$0xff] }
 0x158   : > { %v939_v34 = vld [vmem:[#allocation2 + $0xd0] sm:$0xff]  ;;  %v2744_v37 = vld [vmem:[%s3375_s10 + $0x18] sm:$0xff]   ;;  %v2746_v41 = vld [vmem:[%s3375_s10 + $0x20] sm:$0xff]  }
 0x159   : > { %983 = vperm.xlu1 %2721, %v920_v4   ;;  %978 = vperm.xlu0 %2720, %v919_v5   ;;  %v2745_v38 = vld [vmem:[%s3375_s10 + $0x58] sm:$0xff]   ;;  %v943_v40 = vld [vmem:[#allocation2 + $0xf0] sm:$0xff]  ;;  %v2747_v42 = vld [vmem:[%s3375_s10 + $0x60] sm:$0xff]  }
 0x15a   : > { %2524 = vmatpush3.bf16.xpose.msra.mxu0 %v2727_v54  ;;  %2577 = vmatpush3.bf16.xpose.msra.mxu1 %v2727_v54  ;;  %v944_v39 = vld [vmem:[#allocation2 + $0xf8] sm:$0xff]  ;;  %v2748_v43 = vld [vmem:[%s3375_s10 + $0x28] sm:$0xff]   ;;  %v2750_v45 = vld [vmem:[%s3375_s10 + $0x30] sm:$0xff]  }
 0x15b   : > { %2525 = vmatprep.subr.bf16.mxu0 %v2728_v55  ;;  %2570 = vmatprep.subr.bf16.mxu1 %v2728_v55  ;;  %v2749_v44 = vld [vmem:[%s3375_s10 + $0x68] sm:$0xff]   ;;  %v2751_v46 = vld [vmem:[%s3375_s10 + $0x70] sm:$0xff]   ;;  %v2752_v47 = vld [vmem:[%s3375_s10 + $0x38] sm:$0xff]   ;;  %v1109_v55 = vsub.s32 0, %v3494_v52 }
 0x15c   : > { %v2753_v48 = vld [vmem:[%s3375_s10 + $0x78] sm:$0xff]  }
 0x15d   : > { %993 = vperm.xlu1 %2721, %v922_v6   ;;  %988 = vperm.xlu0 %2720, %v921_v7  }
 0x161   : > { %1003 = vperm.xlu1 %2721, %v924_v10   ;;  %998 = vperm.xlu0 %2720, %v923_v11  }
 0x162   : > { %2526 = vmatpush3.bf16.xpose.msra.mxu0 %v2729_v60  ;;  %2578 = vmatpush3.bf16.xpose.msra.mxu1 %v2729_v60 }
 0x163   : > { %2527 = vmatprep.subr.bf16.mxu0 %v2730_v61  ;;  %2571 = vmatprep.subr.bf16.mxu1 %v2730_v61 }
 0x165   : > { %1013 = vperm.xlu1 %2721, %v926_v12   ;;  %1008 = vperm.xlu0 %2720, %v925_v13  }
 0x169   : > { %1023 = vperm.xlu1 %2721, %v928_v16   ;;  %1018 = vperm.xlu0 %2720, %v927_v17  }
 0x16a   : > { %2528 = vmatpush3.bf16.xpose.msra.mxu0 %v2731_v2  ;;  %2579 = vmatpush3.bf16.xpose.msra.mxu1 %v2731_v2 }
 0x16b   : > { %2529 = vmatprep.subr.bf16.mxu0 %v2732_v3  ;;  %2572 = vmatprep.subr.bf16.mxu1 %v2732_v3 }
 0x16d   : > { %1033 = vperm.xlu1 %2721, %v930_v18   ;;  %1028 = vperm.xlu0 %2720, %v929_v19  }
 0x171   : > { %1043 = vperm.xlu1 %2721, %v932_v21   ;;  %1038 = vperm.xlu0 %2720, %v931_v22  }
 0x172   : > { %2530 = vmatpush3.bf16.xpose.msra.mxu0 %v2733_v8  ;;  %2580 = vmatpush3.bf16.xpose.msra.mxu1 %v2733_v8 }
 0x173   : > { %2531 = vmatprep.subr.bf16.mxu0 %v2734_v9  ;;  %2573 = vmatprep.subr.bf16.mxu1 %v2734_v9 }
 0x175   : > { %1053 = vperm.xlu1 %2721, %v934_v23   ;;  %1048 = vperm.xlu0 %2720, %v933_v24  }
 0x179   : > { %1063 = vperm.xlu1 %2721, %v936_v27   ;;  %1058 = vperm.xlu0 %2720, %v935_v28  }
 0x17a   : > { %2532 = vmatpush3.bf16.xpose.msra.mxu0 %v2735_v14  ;;  %2581 = vmatpush3.bf16.xpose.msra.mxu1 %v2735_v14 }
 0x17b   : > { %2533 = vmatprep.subr.bf16.mxu0 %v2736_v15  ;;  %2574 = vmatprep.subr.bf16.mxu1 %v2736_v15 }
 0x17d   : > { %1073 = vperm.xlu1 %2721, %v938_v29   ;;  %1068 = vperm.xlu0 %2720, %v937_v30  }
 0x181   : > { %1083 = vperm.xlu1 %2721, %v940_v33   ;;  %1078 = vperm.xlu0 %2720, %v939_v34  }
 0x182   : > { %2534 = vmatpush3.bf16.xpose.msra.mxu0 %v2737_v20  ;;  %2582 = vmatpush3.bf16.xpose.msra.mxu1 %v2737_v20 }
 0x185   : > { %1093 = vperm.xlu1 %2721, %v942_v35   ;;  %1088 = vperm.xlu0 %2720, %v941_v36  }
 0x189   : > { %2536 = vmatmul.mubr.bf16.vlgmr.msra.gmra.mrb[0].mxu0 %v3461_v56  ;;  %2552 = vmatmul.mubr.bf16.vlgmr.msra.gmra.mrb[0].mxu1 %v3464_v57  ;;  %v1113_v56 = vsub.s32 1, %v3494_v52  ;;  %v945_v57 = vld [vmem:[%s262_s26] sm:$0x3] }
 0x18a   : > { %2537 = vmatprep.mubr.bf16.mxu0 %v2740_v25  ;;  %2553 = vmatprep.mubr.bf16.mxu1 %v2741_v26  ;;  %v3503_v60 = vrot.slane %v945_v57, %v1109_v55 }
 0x18b   : > { %1103 = vperm.xlu1 %2721, %v944_v39   ;;  %1098 = vperm.xlu0 %2720, %v943_v40   ;;  %v3505_v61 = vrot.slane %v945_v57, %v1113_v56 }
 0x18c   : > { %4921 = vst [vmem:[#allocation17_spill] sm:$0xff] %v3503_v60 }
 0x18d   : > { %4922 = vst [vmem:[#allocation18_spill] sm:$0xff] %v3505_v61 }
 0x191   : > { %2538 = vmatmul.mubr.bf16.gmra.mrb[4].mxu0 %v2740_v25  ;;  %2554 = vmatmul.mubr.bf16.gmra.mrb[4].mxu1 %v2741_v26 }
 0x192   : > { %2539 = vmatprep.mubr.bf16.mxu0 %v2742_v31  ;;  %2555 = vmatprep.mubr.bf16.mxu1 %v2743_v32 }
 0x199   : > { %2540 = vmatmul.mubr.bf16.gmra.mrb[8].mxu0 %v2742_v31  ;;  %2556 = vmatmul.mubr.bf16.gmra.mrb[8].mxu1 %v2743_v32 }
 0x19a   : > { %2541 = vmatprep.mubr.bf16.mxu0 %v2744_v37  ;;  %2557 = vmatprep.mubr.bf16.mxu1 %v2745_v38 }
 0x1a1   : > { %2542 = vmatmul.mubr.bf16.gmra.mrb[12].mxu0 %v2744_v37  ;;  %2558 = vmatmul.mubr.bf16.gmra.mrb[12].mxu1 %v2745_v38 }
 0x1a2   : > { %2543 = vmatprep.mubr.bf16.mxu0 %v2746_v41  ;;  %2559 = vmatprep.mubr.bf16.mxu1 %v2747_v42 }
 0x1a9   : > { %2544 = vmatmul.mubr.bf16.gmra.mrb[16].mxu0 %v2746_v41  ;;  %2560 = vmatmul.mubr.bf16.gmra.mrb[16].mxu1 %v2747_v42 }
 0x1aa   : > { %2545 = vmatprep.mubr.bf16.mxu0 %v2748_v43  ;;  %2561 = vmatprep.mubr.bf16.mxu1 %v2749_v44 }
 0x1b1   : > { %2546 = vmatmul.mubr.bf16.gmra.mrb[20].mxu0 %v2748_v43  ;;  %2562 = vmatmul.mubr.bf16.gmra.mrb[20].mxu1 %v2749_v44 }
 0x1b2   : > { %2547 = vmatprep.mubr.bf16.mxu0 %v2750_v45  ;;  %2563 = vmatprep.mubr.bf16.mxu1 %v2751_v46 }
 0x1b9   : > { %2548 = vmatmul.mubr.bf16.gmra.mrb[24].mxu0 %v2750_v45  ;;  %2564 = vmatmul.mubr.bf16.gmra.mrb[24].mxu1 %v2751_v46 }
 0x1ba   : > { %2549 = vmatprep.mubr.bf16.mxu0 %v2752_v47  ;;  %2565 = vmatprep.mubr.bf16.mxu1 %v2753_v48 }
 0x1c1   : > { %2550 = vmatmul.mubr.bf16.gmra.mrb[28].mxu0 %v2752_v47  ;;  %2566 = vmatmul.mubr.bf16.gmra.mrb[28].mxu1 %v2753_v48 }
 0x1cc   : > { %v959_v50 = vpop.permute.xlu1 %958  ;;  %v949_v51 = vpop.permute.xlu0 %948 }
 0x1cd   : > { %v3564_v36 = vadd.f32 %v3503_v60, %v959_v50  ;;  %v3567_v37 = vadd.f32 %v3505_v61, %v959_v50  ;;  %v1117_v38 = vadd.f32 %v3503_v60, %v949_v51  ;;  %v1118_v39 = vadd.f32 %v3505_v61, %v949_v51 }
 0x1d0   : > { %v964_v53 = vpop.permute.xlu1 %963  ;;  %v954_v54 = vpop.permute.xlu0 %953 }
 0x1d1   : > { %v3572_v40 = vadd.f32 %v3503_v60, %v964_v53  ;;  %v3575_v41 = vadd.f32 %v3505_v61, %v964_v53  ;;  %v3578_v42 = vadd.f32 %v3503_v60, %v954_v54  ;;  %v3581_v43 = vadd.f32 %v3505_v61, %v954_v54 }
 0x1d4   : > { %v974_v58 = vpop.permute.xlu1 %973  ;;  %v969_v59 = vpop.permute.xlu0 %968 }
 0x1d5   : > { %v3584_v44 = vadd.f32 %v3503_v60, %v974_v58  ;;  %v3587_v45 = vadd.f32 %v3505_v61, %v974_v58  ;;  %v3590_v46 = vadd.f32 %v3503_v60, %v969_v59  ;;  %v3593_v47 = vadd.f32 %v3505_v61, %v969_v59 }
 0x1d8   : > { %v984_v62 = vpop.permute.xlu1 %983  ;;  %v979_v63 = vpop.permute.xlu0 %978 }
 0x1d9   : > { %v3508_v0 = vadd.f32 %v3503_v60, %v984_v62  ;;  %v3511_v1 = vadd.f32 %v3505_v61, %v984_v62  ;;  %v3596_v48 = vadd.f32 %v3503_v60, %v979_v63  ;;  %v3599_v50 = vadd.f32 %v3505_v61, %v979_v63 }
 0x1dc   : > { %v994_v2 = vpop.permute.xlu1 %993  ;;  %v989_v3 = vpop.permute.xlu0 %988 }
 0x1dd   : > { %v3514_v4 = vadd.f32 %v3503_v60, %v994_v2  ;;  %v3517_v5 = vadd.f32 %v3505_v61, %v994_v2  ;;  %v3520_v6 = vadd.f32 %v3503_v60, %v989_v3  ;;  %v3523_v7 = vadd.f32 %v3505_v61, %v989_v3 }
 0x1df   : > { %4923 = vst [vmem:[#allocation19_spill] sm:$0xff] %v3514_v4  ;;  %4924 = vst [vmem:[#allocation20_spill] sm:$0xff] %v3517_v5 }
 0x1e0   : > { %4925 = vst [vmem:[#allocation21_spill] sm:$0xff] %v3520_v6  ;;  %4926 = vst [vmem:[#allocation22_spill] sm:$0xff] %v3523_v7  ;;  %v1004_v8 = vpop.permute.xlu1 %1003  ;;  %v999_v9 = vpop.permute.xlu0 %998 }
 0x1e1   : > { %v3526_v10 = vadd.f32 %v3503_v60, %v1004_v8  ;;  %v3529_v11 = vadd.f32 %v3505_v61, %v1004_v8  ;;  %v3532_v12 = vadd.f32 %v3503_v60, %v999_v9  ;;  %v3535_v13 = vadd.f32 %v3505_v61, %v999_v9 }
 0x1e3   : > { %4927 = vst [vmem:[#allocation23_spill] sm:$0xff] %v3526_v10  ;;  %4928 = vst [vmem:[#allocation24_spill] sm:$0xff] %v3529_v11 }
 0x1e4   : > { %4929 = vst [vmem:[#allocation25_spill] sm:$0xff] %v3532_v12  ;;  %4930 = vst [vmem:[#allocation26_spill] sm:$0xff] %v3535_v13  ;;  %v1014_v14 = vpop.permute.xlu1 %1013  ;;  %v1009_v15 = vpop.permute.xlu0 %1008 }
 0x1e5   : > { %v3538_v16 = vadd.f32 %v3503_v60, %v1014_v14  ;;  %v3541_v17 = vadd.f32 %v3505_v61, %v1014_v14  ;;  %v3544_v18 = vadd.f32 %v3503_v60, %v1009_v15  ;;  %v3547_v19 = vadd.f32 %v3505_v61, %v1009_v15 }
 0x1e7   : > { %4931 = vst [vmem:[#allocation27_spill] sm:$0xff] %v3538_v16  ;;  %4932 = vst [vmem:[#allocation28_spill] sm:$0xff] %v3541_v17 }
 0x1e8   : > { %4933 = vst [vmem:[#allocation29_spill] sm:$0xff] %v3544_v18  ;;  %4934 = vst [vmem:[#allocation30_spill] sm:$0xff] %v3547_v19  ;;  %v1024_v20 = vpop.permute.xlu1 %1023  ;;  %v1019_v21 = vpop.permute.xlu0 %1018 }
 0x1e9   : > { %v3550_v22 = vadd.f32 %v3503_v60, %v1024_v20  ;;  %v3553_v23 = vadd.f32 %v3505_v61, %v1024_v20  ;;  %v3556_v24 = vadd.f32 %v3503_v60, %v1019_v21  ;;  %v3559_v25 = vadd.f32 %v3505_v61, %v1019_v21 }
 0x1eb   : > { %4935 = vst [vmem:[#allocation31_spill] sm:$0xff] %v3550_v22  ;;  %4936 = vst [vmem:[#allocation32_spill] sm:$0xff] %v3553_v23 }
 0x1ec   : > { %4937 = vst [vmem:[#allocation33_spill] sm:$0xff] %v3556_v24  ;;  %4938 = vst [vmem:[#allocation34_spill] sm:$0xff] %v3559_v25  ;;  %v1034_v26 = vpop.permute.xlu1 %1033  ;;  %v1029_v27 = vpop.permute.xlu0 %1028 }
 0x1ed   : > { %v3602_v51 = vadd.f32 %v3503_v60, %v1034_v26  ;;  %v3605_v53 = vadd.f32 %v3505_v61, %v1034_v26  ;;  %v1149_v54 = vadd.f32 %v3503_v60, %v1029_v27  ;;  %v1150_v55 = vadd.f32 %v3505_v61, %v1029_v27 }
 0x1f0   : > { %v1044_v28 = vpop.permute.xlu1 %1043  ;;  %v1039_v29 = vpop.permute.xlu0 %1038 }
 0x1f1   : > { %v3610_v56 = vadd.f32 %v3503_v60, %v1044_v28  ;;  %v3613_v57 = vadd.f32 %v3505_v61, %v1044_v28  ;;  %v3616_v62 = vadd.f32 %v3503_v60, %v1039_v29  ;;  %v3619_v63 = vadd.f32 %v3505_v61, %v1039_v29 }
 0x1f4   : > { %v1054_v30 = vpop.permute.xlu1 %1053  ;;  %v1049_v31 = vpop.permute.xlu0 %1048 }
 0x1f5   : > { %v3622_v2 = vadd.f32 %v3503_v60, %v1054_v30  ;;  %v3625_v3 = vadd.f32 %v3505_v61, %v1054_v30  ;;  %v3628_v14 = vadd.f32 %v3503_v60, %v1049_v31  ;;  %v3631_v15 = vadd.f32 %v3505_v61, %v1049_v31 }
 0x1f8   : > { %v1064_v32 = vpop.permute.xlu1 %1063  ;;  %v1059_v33 = vpop.permute.xlu0 %1058 }
 0x1f9   : > { %v3634_v28 = vadd.f32 %v3503_v60, %v1064_v32  ;;  %v3637_v29 = vadd.f32 %v3505_v61, %v1064_v32  ;;  %v3640_v11 = vadd.f32 %v3503_v60, %v1059_v33  ;;  %v3643_v32 = vadd.f32 %v3505_v61, %v1059_v33 }
 0x1fc   : > { %v1074_v34 = vpop.permute.xlu1 %1073  ;;  %v3561_v35 = vpop.permute.xlu0 %1068 }
 0x200   : > { %v1084_v58 = vpop.permute.xlu1 %1083  ;;  %v1079_v59 = vpop.permute.xlu0 %1078 }
 0x25c   : > { %v754_v8 = vpop.f32.mrb[0].mxu0  ;;  %v834_v9 = vpop.f32.mrb[0].mxu1 }
 0x25d   : > { %v1181_v20 = vmul.f32 2.0, %v754_v8  ;;  %v1213_v21 = vmul.f32 2.0, %v834_v9  ;;  %v756_v26 = vpop.f32.mrb[1].mxu0  ;;  %v836_v27 = vpop.f32.mrb[1].mxu1 }
 0x25e   : > { %v1182_v30 = vmul.f32 2.0, %v756_v26  ;;  %v1214_v49 = vmul.f32 2.0, %v836_v27  ;;  %v758_v52 = vpop.f32.mrb[2].mxu0  ;;  %v838_v23 = vpop.f32.mrb[2].mxu1 }
 0x25f   : > { %v1245_v22 = vsub.f32 %v1117_v38, %v1181_v20  ;;  %v1277_v25 = vsub.f32 %v1149_v54, %v1213_v21  ;;  %v1183_v24 = vmul.f32 2.0, %v758_v52  ;;  %v1215_v17 = vmul.f32 2.0, %v838_v23  ;;  %v760_v31 = vpop.f32.mrb[3].mxu0  ;;  %v840_v16 = vpop.f32.mrb[3].mxu1 }
 0x260   : > { %v1246_v8 = vsub.f32 %v1118_v39, %v1182_v30  ;;  %v1278_v9 = vsub.f32 %v1150_v55, %v1214_v49  ;;  %v1184_v19 = vmul.f32 2.0, %v760_v31  ;;  %v1216_v18 = vmul.f32 2.0, %v840_v16  ;;  %v1094_v16 = vpop.permute.xlu1 %1093  ;;  %v3659_v39 = vpop.permute.xlu0 %1088 }
 0x261   : > { %v3645_v26 = vmax.f32 %v1245_v22, 0.0  ;;  %v3647_v27 = vmax.f32 %v1277_v25, 0.0  ;;  %v3650_v38 = vadd.f32 %v3503_v60, %v1074_v34  ;;  %v3653_v52 = vadd.f32 %v3505_v61, %v1074_v34 }
 0x262   : > { %v3655_v23 = vmax.f32 %v1246_v8, 0.0  ;;  %v3657_v49 = vmax.f32 %v1278_v9, 0.0  ;;  %v1247_v22 = vsub.f32 %v3578_v42, %v1183_v24  ;;  %v1279_v25 = vsub.f32 %v3602_v51, %v1215_v17 }
 0x263   : > { %4939 = vst [vmem:[#allocation35_spill] sm:$0xff] %v3650_v38  ;;  %4940 = vst [vmem:[#allocation36_spill] sm:$0xff] %v3653_v52  ;;  %2754 = vrsqrt.f32 %v3645_v26  ;;  %v1248_v33 = vsub.f32 %v3581_v43, %v1184_v19  ;;  %v3667_v54 = vadd.f32 %v3503_v60, %v3561_v35  ;;  %v3671_v34 = vadd.f32 %v3505_v61, %v3561_v35 }
 0x264   : > { %2756 = vrsqrt.f32 %v3647_v27  ;;  %v1280_v55 = vsub.f32 %v3605_v53, %v1216_v18  ;;  %v764_v20 = vpop.f32.mrb[4].mxu0  ;;  %v844_v21 = vpop.f32.mrb[4].mxu1  ;;  %v3676_v24 = vadd.f32 %v3503_v60, %v1084_v58  ;;  %v3679_v17 = vadd.f32 %v3505_v61, %v1084_v58 }
 0x265   : > { %4941 = vst [vmem:[#allocation37_spill] sm:$0xff] %v3667_v54  ;;  %4942 = vst [vmem:[#allocation38_spill] sm:$0xff] %v3671_v34  ;;  %v3682_v19 = vadd.f32 %v3503_v60, %v1079_v59  ;;  %2758 = vrsqrt.f32 %v3655_v23  ;;  %v766_v42 = vpop.f32.mrb[5].mxu0  ;;  %v846_v35 = vpop.f32.mrb[5].mxu1  ;;  %v3686_v43 = vadd.f32 %v3505_v61, %v1079_v59  ;;  %v3689_v18 = vadd.f32 %v3503_v60, %v1094_v16 }
 0x266   : > { %4943 = vst [vmem:[#allocation39_spill] sm:$0xff] %v3676_v24  ;;  %4944 = vst [vmem:[#allocation40_spill] sm:$0xff] %v3679_v17  ;;  %v3692_v51 = vadd.f32 %v3505_v61, %v1094_v16  ;;  %2760 = vrsqrt.f32 %v3657_v49  ;;  %v3695_v53 = vpop.f32.mrb[6].mxu0  ;;  %v3697_v58 = vpop.f32.mrb[6].mxu1  ;;  %v3701_v30 = vadd.f32 %v3503_v60, %v3659_v39  ;;  %v3703_v31 = vmax.f32 %v1247_v22, 0.0 }
 0x267   : > { %4945 = vst [vmem:[#allocation41_spill] sm:$0xff] %v3682_v19  ;;  %4946 = vst [vmem:[#allocation42_spill] sm:$0xff] %v3686_v43  ;;  %v3705_v59 = vmax.f32 %v1279_v25, 0.0  ;;  %v3707_v8 = vmax.f32 %v1248_v33, 0.0  ;;  %v3709_v9 = vpop.f32.mrb[7].mxu0  ;;  %v3711_v16 = vpop.f32.mrb[7].mxu1 }
 0x268   : > { %4947 = vst [vmem:[#allocation43_spill] sm:$0xff] %v3689_v18  ;;  %4948 = vst [vmem:[#allocation44_spill] sm:$0xff] %v3692_v51  ;;  %vm1375_vm1 = vcmp.eq.f32.partialorder %v3645_v26, inf  ;;  %vm1377_vm2 = vcmp.eq.f32.partialorder %v3645_v26, 0.0  ;;  %v1378_v51 = vand.u32 2147483648, %v3645_v26  ;;  %v3716_v18 = vmax.f32 %v1280_v55, 0.0 }
 0x269   : > { %4949 = vst [vmem:[#allocation45_spill] sm:$0xff] %v3701_v30  ;;  %vm1599_vm3 = vcmp.eq.f32.partialorder %v3647_v27, inf  ;;  %2762 = vrsqrt.f32 %v3703_v31  ;;  %v1185_v22 = vmul.f32 2.0, %v764_v20  ;;  %v1217_v25 = vmul.f32 2.0, %v844_v21 }
 0x26a   : > { %vm1601_vm4 = vcmp.eq.f32.partialorder %v3647_v27, 0.0  ;;  %v1602_v33 = vand.u32 2147483648, %v3647_v27  ;;  %vm1382_vm5 = vcmp.eq.f32.partialorder %v3655_v23, inf  ;;  %2764 = vrsqrt.f32 %v3705_v59 }
 0x26b   : > { %vm1384_vm6 = vcmp.eq.f32.partialorder %v3655_v23, 0.0  ;;  %v1385_v30 = vand.u32 2147483648, %v3655_v23  ;;  %2766 = vrsqrt.f32 %v3707_v8  ;;  %v1186_v55 = vmul.f32 2.0, %v766_v42 }
 0x26c   : > { %vm1606_vm7 = vcmp.eq.f32.partialorder %v3657_v49, inf  ;;  %vm1608_vm8 = vcmp.eq.f32.partialorder %v3657_v49, 0.0  ;;  %v1609_v20 = vand.u32 2147483648, %v3657_v49  ;;  %2768 = vrsqrt.f32 %v3716_v18  ;;  %v3731_v21 = vpop.f32.mrb[8].mxu0  ;;  %v3733_v60 = vpop.f32.mrb[8].mxu1 }
 0x26d   : > { %v2755_v17 = vpop.eup %2754  ;;  %vm1389_vm9 = vcmp.eq.f32.partialorder %v3703_v31, inf  ;;  %v1249_v24 = vsub.f32 %v3564_v36, %v1185_v22  ;;  %v1281_v10 = vsub.f32 %v3616_v62, %v1217_v25  ;;  %v1218_v42 = vmul.f32 2.0, %v846_v35  ;;  %v3738_v43 = vpop.f32.mrb[9].mxu0 }
 0x26e   : > { %v3740_v13 = vpop.f32.mrb[9].mxu1  ;;  %v2757_v19 = vpop.eup %2756  ;;  %v1374_v12 = vmul.f32 %v2755_v17, %v3645_v26  ;;  %vm1391_vm10 = vcmp.eq.f32.partialorder %v3703_v31, 0.0  ;;  %v1392_v52 = vand.u32 2147483648, %v3703_v31  ;;  %vm1613_vm11 = vcmp.eq.f32.partialorder %v3705_v59, inf }
 0x26f   : > { %v3747_v38 = vpop.f32.mrb[10].mxu0  ;;  %v3749_v36 = vpop.f32.mrb[10].mxu1  ;;  %v1598_v35 = vmul.f32 %v2757_v19, %v3647_v27  ;;  %vm1615_vm12 = vcmp.eq.f32.partialorder %v3705_v59, 0.0  ;;  %vm1396_vm13 = vcmp.eq.f32.partialorder %v3707_v8, inf  ;;  %v1399_v17 = vand.u32 2147483648, %v3707_v8 }
 0x270   : > { %v2759_v62 = vpop.eup %2758  ;;  %v3755_v22 = vmax.f32 %v1249_v24, 0.0  ;;  %v1250_v25 = vsub.f32 %v3567_v37, %v1186_v55  ;;  %v3758_v4 = vpop.f32.mrb[11].mxu0  ;;  %v1376_v7 = vsel %vm1375_vm1, %v3645_v26, %v1374_v12  ;;  %vm1398_vm14 = vcmp.eq.f32.partialorder %v3707_v8, 0.0 }
 0x271   : > { %v3760_v5 = vpop.f32.mrb[11].mxu1  ;;  %v2761_v34 = vpop.eup %2760  ;;  %v1381_v19 = vmul.f32 %v2759_v62, %v3655_v23  ;;  %vm1620_vm15 = vcmp.eq.f32.partialorder %v3716_v18, inf  ;;  %v1623_v24 = vand.u32 2147483648, %v3716_v18  ;;  %v3769_v54 = vmax.f32 %v1281_v10, 0.0 }
 0x272   : > { %v1379_v37 = vsel %vm1377_vm2, %v1378_v51, %v1376_v7  ;;  %v1600_v55 = vsel %vm1599_vm3, %v3647_v27, %v1598_v35  ;;  %v1605_v12 = vmul.f32 %v2761_v34, %v3657_v49  ;;  %2770 = vrsqrt.f32 %v3755_v22 }
 0x273   : > { %v1821_v62 = vsub.f32 0.0, %v1379_v37  ;;  %v1603_v6 = vsel %vm1601_vm4, %v1602_v33, %v1600_v55  ;;  %v1383_v10 = vsel %vm1382_vm5, %v3655_v23, %v1381_v19  ;;  %v1282_v26 = vsub.f32 %v3619_v63, %v1218_v42  ;;  %v2763_v7 = vpop.eup %2762 }
 0x274   : > { %v1853_v51 = vsub.f32 0.0, %v1603_v6  ;;  %v1386_v35 = vsel %vm1384_vm6, %v1385_v30, %v1383_v10  ;;  %v1607_v34 = vsel %vm1606_vm7, %v3657_v49, %v1605_v12  ;;  %v3789_v37 = vmax.f32 %v1250_v25, 0.0  ;;  %v2765_v27 = vpop.eup %2764  ;;  %v3796_v42 = vpop.f32.mrb[12].mxu0 }
 0x275   : > { %1885 = vst [vmem:[%s3402_s15] sm:$0xff] %v1821_v62  ;;  %v1822_v33 = vsub.f32 0.0, %v1386_v35  ;;  %v1610_v19 = vsel %vm1608_vm8, %v1609_v20, %v1607_v34  ;;  %v1388_v63 = vmul.f32 %v2763_v7, %v3703_v31  ;;  %v1187_v6 = vmul.f32 2.0, %v3695_v53  ;;  %v3798_v23 = vpop.f32.mrb[12].mxu1  ;;  %v2767_v30 = vpop.eup %2766 }
 0x276   : > { %1917 = vst [vmem:[%s3402_s15 + $0x100] sm:$0xff] %v1853_v51  ;;  %v1854_v25 = vsub.f32 0.0, %v1610_v19  ;;  %v1612_v55 = vmul.f32 %v2765_v27, %v3705_v59  ;;  %2772 = vrsqrt.f32 %v3769_v54  ;;  %v1219_v12 = vmul.f32 2.0, %v3697_v58  ;;  %v3804_v49 = vpop.f32.mrb[13].mxu0  ;;  %v3806_v20 = vpop.f32.mrb[13].mxu1 }
 0x277   : > { %v2769_v62 = vpop.eup %2768  ;;  %1886 = vst [vmem:[%s3402_s15 + $0x8] sm:$0xff] %v1822_v33  ;;  %v1390_v53 = vsel %vm1389_vm9, %v3703_v31, %v1388_v63  ;;  %v1395_v10 = vmul.f32 %v2767_v30, %v3707_v8  ;;  %v3813_v7 = vmax.f32 %v1282_v26, 0.0  ;;  %v1188_v51 = vmul.f32 2.0, %v3709_v9  ;;  %v3816_v35 = vpop.f32.mrb[14].mxu0 }
 0x278   : > { %v3818_v34 = vpop.f32.mrb[14].mxu1  ;;  %1918 = vst [vmem:[%s3402_s15 + $0x108] sm:$0xff] %v1854_v25  ;;  %v1393_v58 = vsel %vm1391_vm10, %v1392_v52, %v1390_v53  ;;  %v1614_v27 = vsel %vm1613_vm11, %v3705_v59, %v1612_v55  ;;  %v1619_v33 = vmul.f32 %v2769_v62, %v3716_v18  ;;  %2774 = vrsqrt.f32 %v3789_v37  ;;  %v3828_v26 = vpop.f32.mrb[15].mxu0 }
 0x279   : > { %v3830_v9 = vpop.f32.mrb[15].mxu1  ;;  %v1823_v19 = vsub.f32 0.0, %v1393_v58  ;;  %v4950_v63 = vand.u32 2147483648, %v3705_v59  ;;  %v1397_v52 = vsel %vm1396_vm13, %v3707_v8, %v1395_v10  ;;  %v1251_v30 = vsub.f32 %v3572_v40, %v1187_v6 }
 0x27a   : > { %v1400_v55 = vsel %vm1398_vm14, %v1399_v17, %v1397_v52  ;;  %v1621_v62 = vsel %vm1620_vm15, %v3716_v18, %v1619_v33  ;;  %vm1622_vm0 = vcmp.eq.f32.partialorder %v3716_v18, 0.0  ;;  %v3848_v59 = vadd.f32 %v3505_v61, %v3659_v39 }
 0x27b   : > { %v1617_v31 = vsel %vm1615_vm12, %v4950_v63, %v1614_v27  ;;  %1887 = vst [vmem:[%s3402_s15 + $0x10] sm:$0xff] %v1823_v19  ;;  %v1824_v53 = vsub.f32 0.0, %v1400_v55  ;;  %v1624_v10 = vsel %vm1622_vm0, %v1623_v24, %v1621_v62  ;;  %2776 = vrsqrt.f32 %v3813_v7 }
 0x27c   : > { %v1855_v25 = vsub.f32 0.0, %v1617_v31  ;;  %4951 = vst [vmem:[#allocation46_spill] sm:$0xff] %v3848_v59  ;;  %v2771_v40 = vpop.eup %2770  ;;  %v1856_v8 = vsub.f32 0.0, %v1624_v10  ;;  %vm1403_vm1 = vcmp.eq.f32.partialorder %v3755_v22, inf  ;;  %vm1405_vm2 = vcmp.eq.f32.partialorder %v3755_v22, 0.0  ;;  %v3862_v58 = vpop.f32.mrb[16].mxu0 }
 0x27d   : > { %v1406_v17 = vand.u32 2147483648, %v3755_v22  ;;  %1888 = vst [vmem:[%s3402_s15 + $0x18] sm:$0xff] %v1824_v53  ;;  %v1402_v18 = vmul.f32 %v2771_v40, %v3755_v22  ;;  %v3858_v39 = vmax.f32 %v1251_v30, 0.0  ;;  %v1283_v6 = vsub.f32 %v3610_v56, %v1219_v12  ;;  %v3864_v27 = vpop.f32.mrb[16].mxu1  ;;  %v3871_v63 = vpop.f32.mrb[17].mxu0 }
 0x27e   : > { %1919 = vst [vmem:[%s3402_s15 + $0x110] sm:$0xff] %v1855_v25  ;;  %v1252_v24 = vsub.f32 %v3575_v41, %v1188_v51  ;;  %1920 = vst [vmem:[%s3402_s15 + $0x118] sm:$0xff] %v1856_v8  ;;  %vm1627_vm3 = vcmp.eq.f32.partialorder %v3769_v54, inf  ;;  %vm1629_vm4 = vcmp.eq.f32.partialorder %v3769_v54, 0.0  ;;  %v1220_v33 = vmul.f32 2.0, %v3711_v16  ;;  %v3873_v31 = vpop.f32.mrb[17].mxu1 }
 0x27f   : > { %v1189_v19 = vmul.f32 2.0, %v3731_v21  ;;  %v1404_v41 = vsel %vm1403_vm1, %v3755_v22, %v1402_v18  ;;  %v1630_v56 = vand.u32 2147483648, %v3769_v54  ;;  %vm1410_vm5 = vcmp.eq.f32.partialorder %v3789_v37, inf  ;;  %v3881_v12 = vpop.f32.mrb[18].mxu0  ;;  %v3883_v51 = vpop.f32.mrb[18].mxu1 }
 0x280   : > { %2778 = vrsqrt.f32 %v3858_v39  ;;  %v2773_v16 = vpop.eup %2772  ;;  %v1407_v21 = vsel %vm1405_vm2, %v1406_v17, %v1404_v41  ;;  %v3887_v52 = vmax.f32 %v1283_v6, 0.0  ;;  %v3889_v30 = vmax.f32 %v1252_v24, 0.0  ;;  %v3892_v55 = vpop.f32.mrb[19].mxu0 }
 0x281   : > { %v1221_v25 = vmul.f32 2.0, %v3733_v60  ;;  %v3894_v62 = vpop.f32.mrb[19].mxu1  ;;  %v1825_v53 = vsub.f32 0.0, %v1407_v21  ;;  %v1626_v10 = vmul.f32 %v2773_v16, %v3769_v54  ;;  %v1284_v40 = vsub.f32 %v3613_v57, %v1220_v33 }
 0x282   : > { %v1253_v8 = vsub.f32 %v3590_v46, %v1189_v19  ;;  %v2775_v22 = vpop.eup %2774  ;;  %vm1412_vm6 = vcmp.eq.f32.partialorder %v3789_v37, 0.0  ;;  %v1413_v17 = vand.u32 2147483648, %v3789_v37  ;;  %vm1634_vm7 = vcmp.eq.f32.partialorder %v3813_v7, inf }
 0x283   : > { %2780 = vrsqrt.f32 %v3887_v52  ;;  %1889 = vst [vmem:[%s3402_s15 + $0x20] sm:$0xff] %v1825_v53  ;;  %v1628_v60 = vsel %vm1627_vm3, %v3769_v54, %v1626_v10  ;;  %v1409_v18 = vmul.f32 %v2775_v22, %v3789_v37  ;;  %vm1636_vm8 = vcmp.eq.f32.partialorder %v3813_v7, 0.0 }
 0x284   : > { %2782 = vrsqrt.f32 %v3889_v30  ;;  %v1631_v46 = vsel %vm1629_vm4, %v1630_v56, %v1628_v60  ;;  %v1637_v57 = vand.u32 2147483648, %v3813_v7  ;;  %v3913_v6 = vmax.f32 %v1284_v40, 0.0  ;;  %v3922_v53 = vpop.f32.mrb[20].mxu0  ;;  %v3924_v54 = vpop.f32.mrb[20].mxu1 }
 0x285   : > { %v1190_v24 = vmul.f32 2.0, %v3738_v43  ;;  %v2777_v33 = vpop.eup %2776  ;;  %v1857_v19 = vsub.f32 0.0, %v1631_v46  ;;  %v1411_v41 = vsel %vm1410_vm5, %v3789_v37, %v1409_v18  ;;  %v3919_v16 = vmax.f32 %v1253_v8, 0.0  ;;  %v3931_v43 = vpop.f32.mrb[21].mxu0 }
 0x286   : > { %v1285_v21 = vsub.f32 %v3628_v14, %v1221_v25  ;;  %v1414_v56 = vsel %vm1412_vm6, %v1413_v17, %v1411_v41  ;;  %v1633_v10 = vmul.f32 %v2777_v33, %v3813_v7  ;;  %vm1417_vm9 = vcmp.eq.f32.partialorder %v3858_v39, inf  ;;  %v3933_v40 = vpop.f32.mrb[21].mxu1  ;;  %v3939_v37 = vpop.f32.mrb[22].mxu0 }
 0x287   : > { %2784 = vrsqrt.f32 %v3913_v6  ;;  %1921 = vst [vmem:[%s3402_s15 + $0x120] sm:$0xff] %v1857_v19  ;;  %v1826_v14 = vsub.f32 0.0, %v1414_v56  ;;  %vm1419_vm10 = vcmp.eq.f32.partialorder %v3858_v39, 0.0  ;;  %v1420_v25 = vand.u32 2147483648, %v3858_v39  ;;  %v3941_v8 = vpop.f32.mrb[22].mxu1  ;;  %v3949_v60 = vpop.f32.mrb[23].mxu0 }
 0x288   : > { %2786 = vrsqrt.f32 %v3919_v16  ;;  %v1635_v22 = vsel %vm1634_vm7, %v3813_v7, %v1633_v10  ;;  %vm1641_vm11 = vcmp.eq.f32.partialorder %v3887_v52, inf  ;;  %vm1643_vm12 = vcmp.eq.f32.partialorder %v3887_v52, 0.0  ;;  %4952 = vst [vmem:[#allocation47_spill] sm:$0xff] %v3949_v60  ;;  %v3951_v18 = vpop.f32.mrb[23].mxu1 }
 0x289   : > { %v1644_v17 = vand.u32 2147483648, %v3887_v52  ;;  %1890 = vst [vmem:[%s3402_s15 + $0x28] sm:$0xff] %v1826_v14  ;;  %v1638_v33 = vsel %vm1636_vm8, %v1637_v57, %v1635_v22  ;;  %v3956_v19 = vmax.f32 %v1285_v21, 0.0  ;;  %v1254_v41 = vsub.f32 %v3593_v47, %v1190_v24 }
 0x28a   : > { %v2779_v46 = vpop.eup %2778  ;;  %v1222_v56 = vmul.f32 2.0, %v3740_v13  ;;  %v1858_v10 = vsub.f32 0.0, %v1638_v33  ;;  %v1191_v59 = vmul.f32 2.0, %v3747_v38  ;;  %v1223_v60 = vmul.f32 2.0, %v3749_v36 }
 0x28b   : > { %v1416_v61 = vmul.f32 %v2779_v46, %v3858_v39  ;;  %vm1424_vm13 = vcmp.eq.f32.partialorder %v3889_v30, inf  ;;  %vm1426_vm14 = vcmp.eq.f32.partialorder %v3889_v30, 0.0  ;;  %v1427_v7 = vand.u32 2147483648, %v3889_v30 }
 0x28c   : > { %2788 = vrsqrt.f32 %v3956_v19  ;;  %1922 = vst [vmem:[%s3402_s15 + $0x128] sm:$0xff] %v1858_v10  ;;  %v3971_v47 = vmax.f32 %v1254_v41, 0.0  ;;  %v1286_v38 = vsub.f32 %v3631_v15, %v1222_v56  ;;  %v1255_v36 = vsub.f32 %v3584_v44, %v1191_v59  ;;  %v3980_v46 = vpop.f32.mrb[24].mxu0 }
 0x28d   : > { %v2781_v57 = vpop.eup %2780  ;;  %v1418_v13 = vsel %vm1417_vm9, %v3858_v39, %v1416_v61  ;;  %vm1648_vm15 = vcmp.eq.f32.partialorder %v3913_v6, inf  ;;  %v1287_v22 = vsub.f32 %v3622_v2, %v1223_v60  ;;  %v3982_v61 = vpop.f32.mrb[24].mxu1  ;;  %vm1650_vm0 = vcmp.eq.f32.partialorder %v3913_v6, 0.0 }
 0x28e   : > { %v2783_v24 = vpop.eup %2782  ;;  %v1421_v21 = vsel %vm1419_vm10, %v1420_v25, %v1418_v13  ;;  %v1640_v14 = vmul.f32 %v2781_v57, %v3887_v52  ;;  %2790 = vrsqrt.f32 %v3971_v47  ;;  %v3987_v44 = vpop.f32.mrb[25].mxu0  ;;  %v1651_v39 = vand.u32 2147483648, %v3913_v6 }
 0x28f   : > { %v1827_v33 = vsub.f32 0.0, %v1421_v21  ;;  %v1423_v15 = vmul.f32 %v2783_v24, %v3889_v30  ;;  %v3989_v59 = vpop.f32.mrb[25].mxu1  ;;  %vm1431_vm1 = vcmp.eq.f32.partialorder %v3919_v16, inf  ;;  %v3996_v25 = vmax.f32 %v1286_v38, 0.0  ;;  %v3998_v60 = vpop.f32.mrb[26].mxu0 }
 0x290   : > { %v1642_v2 = vsel %vm1641_vm11, %v3887_v52, %v1640_v14  ;;  %v4000_v41 = vpop.f32.mrb[26].mxu1  ;;  %v4008_v13 = vmax.f32 %v1255_v36, 0.0  ;;  %v4010_v24 = vmax.f32 %v1287_v22, 0.0  ;;  %v4012_v38 = vpop.f32.mrb[27].mxu0  ;;  %vm1433_vm2 = vcmp.eq.f32.partialorder %v3919_v16, 0.0 }
 0x291   : > { %4953 = vst [vmem:[#allocation48_spill] sm:$0xff] %v4000_v41  ;;  %v2785_v56 = vpop.eup %2784  ;;  %1891 = vst [vmem:[%s3402_s15 + $0x30] sm:$0xff] %v1827_v33  ;;  %v1645_v10 = vsel %vm1643_vm12, %v1644_v17, %v1642_v2  ;;  %v1425_v57 = vsel %vm1424_vm13, %v3889_v30, %v1423_v15  ;;  %v4014_v21 = vpop.f32.mrb[27].mxu1  ;;  %2792 = vrsqrt.f32 %v3996_v25  ;;  %v1434_v22 = vand.u32 2147483648, %v3919_v16 }
 0x292   : > { %v2787_v14 = vpop.eup %2786  ;;  %v1859_v41 = vsub.f32 0.0, %v1645_v10  ;;  %v1428_v52 = vsel %vm1426_vm14, %v1427_v7, %v1425_v57  ;;  %v1647_v17 = vmul.f32 %v2785_v56, %v3913_v6  ;;  %vm1655_vm3 = vcmp.eq.f32.partialorder %v3956_v19, inf }
 0x293   : > { %v1828_v33 = vsub.f32 0.0, %v1428_v52  ;;  %v1430_v36 = vmul.f32 %v2787_v14, %v3919_v16  ;;  %2794 = vrsqrt.f32 %v4008_v13  ;;  %v1192_v30 = vmul.f32 2.0, %v3758_v4 }
 0x294   : > { %1923 = vst [vmem:[%s3402_s15 + $0x130] sm:$0xff] %v1859_v41  ;;  %v1649_v15 = vsel %vm1648_vm15, %v3913_v6, %v1647_v17  ;;  %vm1657_vm4 = vcmp.eq.f32.partialorder %v3956_v19, 0.0  ;;  %v1658_v41 = vand.u32 2147483648, %v3956_v19  ;;  %vm1438_vm5 = vcmp.eq.f32.partialorder %v3971_v47, inf  ;;  %v4040_v4 = vpop.f32.mrb[28].mxu0  ;;  %v4042_v6 = vpop.f32.mrb[28].mxu1 }
 0x295   : > { %1892 = vst [vmem:[%s3402_s15 + $0x38] sm:$0xff] %v1828_v33  ;;  %v1652_v7 = vsel %vm1650_vm0, %v1651_v39, %v1649_v15  ;;  %v1432_v2 = vsel %vm1431_vm1, %v3919_v16, %v1430_v36  ;;  %2796 = vrsqrt.f32 %v4010_v24  ;;  %vm1440_vm6 = vcmp.eq.f32.partialorder %v3971_v47, 0.0  ;;  %v4047_v52 = vpop.f32.mrb[29].mxu0  ;;  %v4049_v17 = vpop.f32.mrb[29].mxu1 }
 0x296   : > { %v2789_v56 = vpop.eup %2788  ;;  %v1860_v10 = vsub.f32 0.0, %v1652_v7  ;;  %v1435_v57 = vsel %vm1433_vm2, %v1434_v22, %v1432_v2  ;;  %v1441_v14 = vand.u32 2147483648, %v3971_v47  ;;  %4954 = vst [vmem:[#allocation49_spill] sm:$0xff] %v4049_v17  ;;  %v1256_v33 = vsub.f32 %v3587_v45, %v1192_v30  ;;  %v4056_v7 = vpop.f32.mrb[30].mxu0 }
 0x297   : > { %v1829_v39 = vsub.f32 0.0, %v1435_v57  ;;  %v1654_v16 = vmul.f32 %v2789_v56, %v3956_v19  ;;  %v1224_v36 = vmul.f32 2.0, %v3760_v5  ;;  %v1193_v22 = vmul.f32 2.0, %v3796_v42  ;;  %4955 = vst [vmem:[#allocation50_spill] sm:$0xff] %v4056_v7  ;;  %v4058_v2 = vpop.f32.mrb[30].mxu1  ;;  %v4067_v45 = vpop.f32.mrb[31].mxu0 }
 0x298   : > { %1924 = vst [vmem:[%s3402_s15 + $0x138] sm:$0xff] %v1860_v10  ;;  %v1225_v15 = vmul.f32 2.0, %v3798_v23  ;;  %4956 = vst [vmem:[#allocation51_spill] sm:$0xff] %v4058_v2  ;;  %v2791_v56 = vpop.eup %2790  ;;  %vm1662_vm7 = vcmp.eq.f32.partialorder %v3996_v25, inf  ;;  %vm1664_vm8 = vcmp.eq.f32.partialorder %v3996_v25, 0.0  ;;  %v1194_v5 = vmul.f32 2.0, %v3804_v49 }
 0x299   : > { %1893 = vst [vmem:[%s3402_s15 + $0x40] sm:$0xff] %v1829_v39  ;;  %v1656_v57 = vsel %vm1655_vm3, %v3956_v19, %v1654_v16  ;;  %v4069_v42 = vpop.f32.mrb[31].mxu1  ;;  %v1437_v30 = vmul.f32 %v2791_v56, %v3971_v47  ;;  %v4074_v10 = vmax.f32 %v1256_v33, 0.0  ;;  %v1288_v39 = vsub.f32 %v3625_v3, %v1224_v36 }
 0x29a   : > { %4957 = vst [vmem:[#allocation52_spill] sm:$0xff] %v4069_v42  ;;  %v1659_v23 = vsel %vm1657_vm4, %v1658_v41, %v1656_v57  ;;  %v1257_v2 = vsub.f32 %v3596_v48, %v1193_v22  ;;  %v1289_v7 = vsub.f32 %v3640_v11, %v1225_v15  ;;  %v1258_v49 = vsub.f32 %v3599_v50, %v1194_v5 }
 0x29b   : > { %v1861_v16 = vsub.f32 0.0, %v1659_v23  ;;  %v2793_v17 = vpop.eup %2792  ;;  %v1439_v42 = vsel %vm1438_vm5, %v3971_v47, %v1437_v30  ;;  %v1665_v19 = vand.u32 2147483648, %v3996_v25  ;;  %vm1445_vm9 = vcmp.eq.f32.partialorder %v4008_v13, inf }
 0x29c   : > { %2798 = vrsqrt.f32 %v4074_v10  ;;  %v1442_v48 = vsel %vm1440_vm6, %v1441_v14, %v1439_v42  ;;  %v1661_v11 = vmul.f32 %v2793_v17, %v3996_v25  ;;  %vm1447_vm10 = vcmp.eq.f32.partialorder %v4008_v13, 0.0 }
 0x29d   : > { %1925 = vst [vmem:[%s3402_s15 + $0x140] sm:$0xff] %v1861_v16  ;;  %v4091_v50 = vmax.f32 %v1288_v39, 0.0  ;;  %v2795_v3 = vpop.eup %2794  ;;  %v1830_v41 = vsub.f32 0.0, %v1442_v48  ;;  %v1448_v33 = vand.u32 2147483648, %v4008_v13  ;;  %v4094_v36 = vmax.f32 %v1257_v2, 0.0 }
 0x29e   : > { %v4096_v22 = vmax.f32 %v1289_v7, 0.0  ;;  %v1663_v15 = vsel %vm1662_vm7, %v3996_v25, %v1661_v11  ;;  %v1444_v47 = vmul.f32 %v2795_v3, %v4008_v13  ;;  %vm1669_vm11 = vcmp.eq.f32.partialorder %v4010_v24, inf }
 0x29f   : > { %2800 = vrsqrt.f32 %v4091_v50  ;;  %v2797_v14 = vpop.eup %2796  ;;  %1894 = vst [vmem:[%s3402_s15 + $0x48] sm:$0xff] %v1830_v41  ;;  %v1666_v17 = vsel %vm1664_vm8, %v1665_v19, %v1663_v15  ;;  %vm1671_vm12 = vcmp.eq.f32.partialorder %v4010_v24, 0.0  ;;  %v4109_v7 = vmax.f32 %v1258_v49, 0.0 }
 0x2a0   : > { %2802 = vrsqrt.f32 %v4094_v36  ;;  %v1862_v2 = vsub.f32 0.0, %v1666_v17  ;;  %v1446_v56 = vsel %vm1445_vm9, %v4008_v13, %v1444_v47  ;;  %v1668_v57 = vmul.f32 %v2797_v14, %v4010_v24 }
 0x2a1   : > { %v1226_v5 = vmul.f32 2.0, %v3806_v20  ;;  %v1449_v25 = vsel %vm1447_vm10, %v1448_v33, %v1446_v56  ;;  %v1672_v42 = vand.u32 2147483648, %v4010_v24  ;;  %2804 = vrsqrt.f32 %v4096_v22 }
 0x2a2   : > { %v1195_v23 = vmul.f32 2.0, %v3816_v35  ;;  %1926 = vst [vmem:[%s3402_s15 + $0x148] sm:$0xff] %v1862_v2  ;;  %v1831_v30 = vsub.f32 0.0, %v1449_v25  ;;  %v1670_v39 = vsel %vm1669_vm11, %v4010_v24, %v1668_v57  ;;  %vm1452_vm13 = vcmp.eq.f32.partialorder %v4074_v10, inf }
 0x2a3   : > { %vm1454_vm14 = vcmp.eq.f32.partialorder %v4074_v10, 0.0  ;;  %v1673_v20 = vsel %vm1671_vm12, %v1672_v42, %v1670_v39  ;;  %v1455_v13 = vand.u32 2147483648, %v4074_v10  ;;  %vm1676_vm15 = vcmp.eq.f32.partialorder %v4091_v50, inf }
 0x2a4   : > { %2806 = vrsqrt.f32 %v4109_v7  ;;  %1895 = vst [vmem:[%s3402_s15 + $0x50] sm:$0xff] %v1831_v30  ;;  %v1863_v35 = vsub.f32 0.0, %v1673_v20  ;;  %vm1678_vm0 = vcmp.eq.f32.partialorder %v4091_v50, 0.0  ;;  %v1679_v16 = vand.u32 2147483648, %v4091_v50 }
 0x2a5   : > { %v1290_v49 = vsub.f32 %v3643_v32, %v1226_v5  ;;  %v1259_v48 = vsub.f32 %v3508_v0, %v1195_v23  ;;  %v1227_v24 = vmul.f32 2.0, %v3818_v34  ;;  %v1196_v11 = vmul.f32 2.0, %v3828_v26 }
 0x2a6   : > { %v2799_v19 = vpop.eup %2798  ;;  %v1228_v3 = vmul.f32 2.0, %v3830_v9  ;;  %1927 = vst [vmem:[%s3402_s15 + $0x150] sm:$0xff] %v1863_v35  ;;  %vm1459_vm1 = vcmp.eq.f32.partialorder %v4094_v36, inf  ;;  %vm1461_vm2 = vcmp.eq.f32.partialorder %v4094_v36, 0.0  ;;  %v1462_v47 = vand.u32 2147483648, %v4094_v36 }
 0x2a7   : > { %v1451_v41 = vmul.f32 %v2799_v19, %v4074_v10  ;;  %v4144_v33 = vmax.f32 %v1290_v49, 0.0  ;;  %v4146_v15 = vmax.f32 %v1259_v48, 0.0  ;;  %v1291_v32 = vsub.f32 %v3634_v28, %v1227_v24 }
 0x2a8   : > { %v1260_v0 = vsub.f32 %v3511_v1, %v1196_v11  ;;  %v1292_v34 = vsub.f32 %v3637_v29, %v1228_v3  ;;  %vm1683_vm3 = vcmp.eq.f32.partialorder %v4096_v22, inf  ;;  %vm1685_vm4 = vcmp.eq.f32.partialorder %v4096_v22, 0.0 }
 0x2a9   : > { %v2801_v26 = vpop.eup %2800  ;;  %v1453_v9 = vsel %vm1452_vm13, %v4074_v10, %v1451_v41  ;;  %2808 = vrsqrt.f32 %v4144_v33  ;;  %v1686_v2 = vand.u32 2147483648, %v4096_v22  ;;  %vm1466_vm5 = vcmp.eq.f32.partialorder %v4109_v7, inf }
 0x2aa   : > { %v2803_v14 = vpop.eup %2802  ;;  %v1456_v28 = vsel %vm1454_vm14, %v1455_v13, %v1453_v9  ;;  %v1675_v1 = vmul.f32 %v2801_v26, %v4091_v50  ;;  %2810 = vrsqrt.f32 %v4146_v15  ;;  %vm1468_vm6 = vcmp.eq.f32.partialorder %v4109_v7, 0.0 }
 0x2ab   : > { %v1832_v29 = vsub.f32 0.0, %v1456_v28  ;;  %v1458_v17 = vmul.f32 %v2803_v14, %v4094_v36  ;;  %v2805_v56 = vpop.eup %2804  ;;  %v4169_v10 = vmax.f32 %v1291_v32, 0.0  ;;  %v4171_v5 = vmax.f32 %v1260_v0, 0.0  ;;  %v4958_v32 = vld [vmem:[#allocation21_spill] sm:$0xff] }
 0x2ac   : > { %v1677_v57 = vsel %vm1676_vm15, %v4091_v50, %v1675_v1  ;;  %v1682_v23 = vmul.f32 %v2805_v56, %v4096_v22  ;;  %v1197_v30 = vmul.f32 2.0, %v3862_v58  ;;  %v4184_v35 = vmax.f32 %v1292_v34, 0.0  ;;  %v4959_v34 = vld [vmem:[#allocation37_spill] sm:$0xff]  ;;  %v4960_v56 = vld [vmem:[#allocation22_spill] sm:$0xff] }
 0x2ad   : > { %1896 = vst [vmem:[%s3402_s15 + $0x58] sm:$0xff] %v1832_v29  ;;  %v1680_v25 = vsel %vm1678_vm0, %v1679_v16, %v1677_v57  ;;  %v1460_v42 = vsel %vm1459_vm1, %v4094_v36, %v1458_v17  ;;  %2812 = vrsqrt.f32 %v4169_v10  ;;  %v1229_v19 = vmul.f32 2.0, %v3864_v27 }
 0x2ae   : > { %v2807_v39 = vpop.eup %2806  ;;  %v1864_v20 = vsub.f32 0.0, %v1680_v25  ;;  %v1463_v13 = vsel %vm1461_vm2, %v1462_v47, %v1460_v42  ;;  %v1684_v16 = vsel %vm1683_vm3, %v4096_v22, %v1682_v23  ;;  %v1469_v36 = vand.u32 2147483648, %v4109_v7 }
 0x2af   : > { %v1833_v50 = vsub.f32 0.0, %v1463_v13  ;;  %v1465_v49 = vmul.f32 %v2807_v39, %v4109_v7  ;;  %v1687_v58 = vsel %vm1685_vm4, %v1686_v2, %v1684_v16  ;;  %vm1690_vm7 = vcmp.eq.f32.partialorder %v4144_v33, inf }
 0x2b0   : > { %1928 = vst [vmem:[%s3402_s15 + $0x158] sm:$0xff] %v1864_v20  ;;  %2814 = vrsqrt.f32 %v4171_v5  ;;  %v1865_v48 = vsub.f32 0.0, %v1687_v58  ;;  %vm1692_vm8 = vcmp.eq.f32.partialorder %v4144_v33, 0.0  ;;  %v1693_v27 = vand.u32 2147483648, %v4144_v33 }
 0x2b1   : > { %1897 = vst [vmem:[%s3402_s15 + $0x60] sm:$0xff] %v1833_v50  ;;  %v1467_v24 = vsel %vm1466_vm5, %v4109_v7, %v1465_v49  ;;  %vm1473_vm9 = vcmp.eq.f32.partialorder %v4146_v15, inf  ;;  %vm1475_vm10 = vcmp.eq.f32.partialorder %v4146_v15, 0.0  ;;  %2816 = vrsqrt.f32 %v4184_v35 }
 0x2b2   : > { %v1470_v22 = vsel %vm1468_vm6, %v1469_v36, %v1467_v24  ;;  %1929 = vst [vmem:[%s3402_s15 + $0x160] sm:$0xff] %v1865_v48  ;;  %v1476_v41 = vand.u32 2147483648, %v4146_v15  ;;  %v1261_v0 = vsub.f32 %v4958_v32, %v1197_v30  ;;  %v1293_v26 = vsub.f32 %v4959_v34, %v1229_v19  ;;  %v4963_v24 = vld [vmem:[#allocation35_spill] sm:$0xff] }
 0x2b3   : > { %v2809_v11 = vpop.eup %2808  ;;  %v1834_v3 = vsub.f32 0.0, %v1470_v22  ;;  %v1198_v47 = vmul.f32 2.0, %v3871_v63  ;;  %v1230_v14 = vmul.f32 2.0, %v3873_v31  ;;  %v1199_v28 = vmul.f32 2.0, %v3881_v12  ;;  %v4961_v63 = vld [vmem:[#allocation38_spill] sm:$0xff]  ;;  %v4962_v31 = vld [vmem:[#allocation19_spill] sm:$0xff] }
 0x2b4   : > { %v2811_v9 = vpop.eup %2810  ;;  %v1689_v7 = vmul.f32 %v2809_v11, %v4144_v33  ;;  %vm1697_vm11 = vcmp.eq.f32.partialorder %v4169_v10, inf  ;;  %v4219_v29 = vmax.f32 %v1261_v0, 0.0  ;;  %v4221_v17 = vmax.f32 %v1293_v26, 0.0 }
 0x2b5   : > { %1898 = vst [vmem:[%s3402_s15 + $0x68] sm:$0xff] %v1834_v3  ;;  %v1472_v1 = vmul.f32 %v2811_v9, %v4146_v15  ;;  %v1262_v57 = vsub.f32 %v4960_v56, %v1198_v47  ;;  %v1294_v25 = vsub.f32 %v4961_v63, %v1230_v14  ;;  %v1263_v12 = vsub.f32 %v4962_v31, %v1199_v28 }
 0x2b6   : > { %v1691_v2 = vsel %vm1690_vm7, %v4144_v33, %v1689_v7  ;;  %2818 = vrsqrt.f32 %v4219_v29  ;;  %v1231_v30 = vmul.f32 2.0, %v3883_v51  ;;  %vm1699_vm12 = vcmp.eq.f32.partialorder %v4169_v10, 0.0 }
 0x2b7   : > { %v1694_v42 = vsel %vm1692_vm8, %v1693_v27, %v1691_v2  ;;  %v1474_v23 = vsel %vm1473_vm9, %v4146_v15, %v1472_v1  ;;  %v2813_v39 = vpop.eup %2812  ;;  %v1700_v50 = vand.u32 2147483648, %v4169_v10  ;;  %vm1480_vm13 = vcmp.eq.f32.partialorder %v4171_v5, inf }
 0x2b8   : > { %v1866_v20 = vsub.f32 0.0, %v1694_v42  ;;  %v1477_v13 = vsel %vm1475_vm10, %v1476_v41, %v1474_v23  ;;  %v1696_v16 = vmul.f32 %v2813_v39, %v4169_v10  ;;  %2820 = vrsqrt.f32 %v4221_v17  ;;  %v4966_v23 = vld [vmem:[#allocation25_spill] sm:$0xff] }
 0x2b9   : > { %v1835_v33 = vsub.f32 0.0, %v1477_v13  ;;  %vm1482_vm14 = vcmp.eq.f32.partialorder %v4171_v5, 0.0  ;;  %v1483_v51 = vand.u32 2147483648, %v4171_v5  ;;  %v4246_v19 = vmax.f32 %v1262_v57, 0.0  ;;  %v4967_v39 = vld [vmem:[#allocation41_spill] sm:$0xff]  ;;  %v4968_v13 = vld [vmem:[#allocation26_spill] sm:$0xff] }
 0x2ba   : > { %v2815_v49 = vpop.eup %2814  ;;  %1930 = vst [vmem:[%s3402_s15 + $0x168] sm:$0xff] %v1866_v20  ;;  %v4248_v15 = vmax.f32 %v1294_v25, 0.0  ;;  %v1698_v58 = vsel %vm1697_vm11, %v4169_v10, %v1696_v16  ;;  %v4255_v48 = vmax.f32 %v1263_v12, 0.0  ;;  %v1295_v27 = vsub.f32 %v4963_v24, %v1231_v30  ;;  %v4965_v12 = vld [vmem:[#allocation36_spill] sm:$0xff] }
 0x2bb   : > { %1899 = vst [vmem:[%s3402_s15 + $0x70] sm:$0xff] %v1835_v33  ;;  %v1479_v36 = vmul.f32 %v2815_v49, %v4171_v5  ;;  %v2817_v22 = vpop.eup %2816  ;;  %v1701_v11 = vsel %vm1699_vm12, %v1700_v50, %v1698_v58  ;;  %vm1704_vm15 = vcmp.eq.f32.partialorder %v4184_v35, inf  ;;  %vm1706_vm0 = vcmp.eq.f32.partialorder %v4184_v35, 0.0 }
 0x2bc   : > { %2822 = vrsqrt.f32 %v4246_v19  ;;  %v1867_v3 = vsub.f32 0.0, %v1701_v11  ;;  %v1703_v32 = vmul.f32 %v2817_v22, %v4184_v35  ;;  %v1707_v0 = vand.u32 2147483648, %v4184_v35 }
 0x2bd   : > { %v1481_v41 = vsel %vm1480_vm13, %v4171_v5, %v1479_v36  ;;  %vm1487_vm1 = vcmp.eq.f32.partialorder %v4219_v29, inf  ;;  %vm1489_vm2 = vcmp.eq.f32.partialorder %v4219_v29, 0.0  ;;  %2824 = vrsqrt.f32 %v4248_v15 }
 0x2be   : > { %v1484_v10 = vsel %vm1482_vm14, %v1483_v51, %v1481_v41  ;;  %1931 = vst [vmem:[%s3402_s15 + $0x170] sm:$0xff] %v1867_v3  ;;  %v1705_v26 = vsel %vm1704_vm15, %v4184_v35, %v1703_v32  ;;  %v1490_v9 = vand.u32 2147483648, %v4219_v29  ;;  %2826 = vrsqrt.f32 %v4255_v48 }
 0x2bf   : > { %v1836_v34 = vsub.f32 0.0, %v1484_v10  ;;  %v1708_v7 = vsel %vm1706_vm0, %v1707_v0, %v1705_v26  ;;  %vm1711_vm3 = vcmp.eq.f32.partialorder %v4221_v17, inf  ;;  %vm1713_vm4 = vcmp.eq.f32.partialorder %v4221_v17, 0.0 }
 0x2c0   : > { %v1714_v5 = vand.u32 2147483648, %v4221_v17  ;;  %v2819_v47 = vpop.eup %2818  ;;  %v1868_v14 = vsub.f32 0.0, %v1708_v7  ;;  %v4281_v28 = vmax.f32 %v1295_v27, 0.0  ;;  %v1200_v1 = vmul.f32 2.0, %v3892_v55 }
 0x2c1   : > { %1900 = vst [vmem:[%s3402_s15 + $0x78] sm:$0xff] %v1836_v34  ;;  %v1232_v35 = vmul.f32 2.0, %v3894_v62  ;;  %v1486_v2 = vmul.f32 %v2819_v47, %v4219_v29  ;;  %v1201_v56 = vmul.f32 2.0, %v3922_v53  ;;  %v1233_v57 = vmul.f32 2.0, %v3924_v54  ;;  %v4964_v53 = vld [vmem:[#allocation20_spill] sm:$0xff] }
 0x2c2   : > { %v1202_v63 = vmul.f32 2.0, %v3931_v43  ;;  %v2821_v25 = vpop.eup %2820  ;;  %1932 = vst [vmem:[%s3402_s15 + $0x178] sm:$0xff] %v1868_v14  ;;  %vm1494_vm5 = vcmp.eq.f32.partialorder %v4246_v19, inf  ;;  %vm1496_vm6 = vcmp.eq.f32.partialorder %v4246_v19, 0.0  ;;  %v1497_v31 = vand.u32 2147483648, %v4246_v19 }
 0x2c3   : > { %2828 = vrsqrt.f32 %v4281_v28  ;;  %v1488_v55 = vsel %vm1487_vm1, %v4219_v29, %v1486_v2  ;;  %v1710_v62 = vmul.f32 %v2821_v25, %v4221_v17  ;;  %v1264_v54 = vsub.f32 %v4964_v53, %v1200_v1 }
 0x2c4   : > { %v1296_v43 = vsub.f32 %v4965_v12, %v1232_v35  ;;  %v1491_v42 = vsel %vm1489_vm2, %v1490_v9, %v1488_v55  ;;  %v1265_v30 = vsub.f32 %v4966_v23, %v1201_v56  ;;  %v1297_v20 = vsub.f32 %v4967_v39, %v1233_v57  ;;  %v4970_v12 = vld [vmem:[#allocation42_spill] sm:$0xff]  ;;  %v4973_v39 = vld [vmem:[#allocation24_spill] sm:$0xff] }
 0x2c5   : > { %v1266_v50 = vsub.f32 %v4968_v13, %v1202_v63  ;;  %v1837_v16 = vsub.f32 0.0, %v1491_v42  ;;  %v1712_v49 = vsel %vm1711_vm3, %v4221_v17, %v1710_v62  ;;  %v4308_v51 = vmax.f32 %v1264_v54, 0.0  ;;  %v4974_v13 = vld [vmem:[#allocation40_spill] sm:$0xff] }
 0x2c6   : > { %v2823_v33 = vpop.eup %2822  ;;  %v4310_v58 = vmax.f32 %v1296_v43, 0.0  ;;  %v1715_v29 = vsel %vm1713_vm4, %v1714_v5, %v1712_v49  ;;  %vm1718_vm7 = vcmp.eq.f32.partialorder %v4248_v15, inf  ;;  %v4316_v24 = vmax.f32 %v1265_v30, 0.0  ;;  %v4971_v43 = vld [vmem:[#allocation23_spill] sm:$0xff] }
 0x2c7   : > { %v1493_v36 = vmul.f32 %v2823_v33, %v4246_v19  ;;  %v2825_v27 = vpop.eup %2824  ;;  %1901 = vst [vmem:[%s3402_s15 + $0x80] sm:$0xff] %v1837_v16  ;;  %v1869_v22 = vsub.f32 0.0, %v1715_v29  ;;  %vm1720_vm8 = vcmp.eq.f32.partialorder %v4248_v15, 0.0  ;;  %v1721_v11 = vand.u32 2147483648, %v4248_v15  ;;  %v4972_v30 = vld [vmem:[#allocation39_spill] sm:$0xff] }
 0x2c8   : > { %2830 = vrsqrt.f32 %v4308_v51  ;;  %v2827_v3 = vpop.eup %2826  ;;  %v1717_v41 = vmul.f32 %v2825_v27, %v4248_v15  ;;  %v4327_v32 = vmax.f32 %v1297_v20, 0.0  ;;  %vm1501_vm9 = vcmp.eq.f32.partialorder %v4255_v48, inf }
 0x2c9   : > { %v1495_v17 = vsel %vm1494_vm5, %v4246_v19, %v1493_v36  ;;  %2832 = vrsqrt.f32 %v4310_v58  ;;  %1933 = vst [vmem:[%s3402_s15 + $0x180] sm:$0xff] %v1869_v22  ;;  %v1500_v10 = vmul.f32 %v2827_v3, %v4255_v48  ;;  %vm1503_vm10 = vcmp.eq.f32.partialorder %v4255_v48, 0.0 }
 0x2ca   : > { %v1498_v0 = vsel %vm1496_vm6, %v1497_v31, %v1495_v17  ;;  %v1719_v26 = vsel %vm1718_vm7, %v4248_v15, %v1717_v41  ;;  %v1504_v9 = vand.u32 2147483648, %v4255_v48  ;;  %2834 = vrsqrt.f32 %v4316_v24  ;;  %v4969_v31 = vld [vmem:[#allocation47_spill] sm:$0xff] }
 0x2cb   : > { %v1838_v34 = vsub.f32 0.0, %v1498_v0  ;;  %v1722_v19 = vsel %vm1720_vm8, %v1721_v11, %v1719_v26  ;;  %v1502_v7 = vsel %vm1501_vm9, %v4255_v48, %v1500_v10  ;;  %vm1725_vm11 = vcmp.eq.f32.partialorder %v4281_v28, inf }
 0x2cc   : > { %vm1727_vm12 = vcmp.eq.f32.partialorder %v4281_v28, 0.0  ;;  %v1870_v47 = vsub.f32 0.0, %v1722_v19  ;;  %v1505_v14 = vsel %vm1503_vm10, %v1504_v9, %v1502_v7  ;;  %v1728_v1 = vand.u32 2147483648, %v4281_v28 }
 0x2cd   : > { %v2829_v5 = vpop.eup %2828  ;;  %1902 = vst [vmem:[%s3402_s15 + $0x88] sm:$0xff] %v1838_v34  ;;  %2836 = vrsqrt.f32 %v4327_v32  ;;  %v1839_v35 = vsub.f32 0.0, %v1505_v14  ;;  %vm1508_vm13 = vcmp.eq.f32.partialorder %v4308_v51, inf  ;;  %vm1510_vm14 = vcmp.eq.f32.partialorder %v4308_v51, 0.0 }
 0x2ce   : > { %v1724_v2 = vmul.f32 %v2829_v5, %v4281_v28  ;;  %1934 = vst [vmem:[%s3402_s15 + $0x188] sm:$0xff] %v1870_v47  ;;  %v1511_v15 = vand.u32 2147483648, %v4308_v51  ;;  %v4353_v48 = vmax.f32 %v1266_v50, 0.0  ;;  %v1234_v56 = vmul.f32 2.0, %v3933_v40 }
 0x2cf   : > { %v1203_v57 = vmul.f32 2.0, %v3939_v37  ;;  %1903 = vst [vmem:[%s3402_s15 + $0x90] sm:$0xff] %v1839_v35  ;;  %v1235_v25 = vmul.f32 2.0, %v3941_v8  ;;  %v1204_v55 = vmul.f32 2.0, %v4969_v31  ;;  %v1236_v62 = vmul.f32 2.0, %v3951_v18 }
 0x2d0   : > { %v1726_v63 = vsel %vm1725_vm11, %v4281_v28, %v1724_v2  ;;  %vm1732_vm15 = vcmp.eq.f32.partialorder %v4310_v58, inf  ;;  %vm1734_vm0 = vcmp.eq.f32.partialorder %v4310_v58, 0.0  ;;  %2838 = vrsqrt.f32 %v4353_v48  ;;  %v4975_v2 = vld [vmem:[#allocation17_spill] sm:$0xff] }
 0x2d1   : > { %v1729_v53 = vsel %vm1727_vm12, %v1728_v1, %v1726_v63  ;;  %v1735_v54 = vand.u32 2147483648, %v4310_v58  ;;  %v1298_v8 = vsub.f32 %v4970_v12, %v1234_v56  ;;  %v1267_v42 = vsub.f32 %v4971_v43, %v1203_v57 }
 0x2d2   : > { %v2831_v40 = vpop.eup %2830  ;;  %v1871_v37 = vsub.f32 0.0, %v1729_v53  ;;  %v1299_v28 = vsub.f32 %v4972_v30, %v1235_v25  ;;  %v1268_v20 = vsub.f32 %v4973_v39, %v1204_v55  ;;  %v1300_v50 = vsub.f32 %v4974_v13, %v1236_v62  ;;  %v4976_v25 = vld [vmem:[#allocation29_spill] sm:$0xff]  ;;  %v4979_v30 = vld [vmem:[#allocation30_spill] sm:$0xff] }
 0x2d3   : > { %v2833_v23 = vpop.eup %2832  ;;  %v1507_v18 = vmul.f32 %v2831_v40, %v4308_v51  ;;  %vm1515_vm1 = vcmp.eq.f32.partialorder %v4316_v24, inf  ;;  %vm1517_vm2 = vcmp.eq.f32.partialorder %v4316_v24, 0.0  ;;  %v4380_v16 = vmax.f32 %v1298_v8, 0.0  ;;  %v4977_v8 = vld [vmem:[#allocation48_spill] sm:$0xff]  ;;  %v4980_v39 = vld [vmem:[#allocation46_spill] sm:$0xff] }
 0x2d4   : > { %1935 = vst [vmem:[%s3402_s15 + $0x190] sm:$0xff] %v1871_v37  ;;  %v1731_v33 = vmul.f32 %v2833_v23, %v4310_v58  ;;  %v2835_v49 = vpop.eup %2834  ;;  %v1518_v36 = vand.u32 2147483648, %v4316_v24  ;;  %v4386_v27 = vmax.f32 %v1267_v42, 0.0  ;;  %v4388_v22 = vmax.f32 %v1299_v28, 0.0  ;;  %v4978_v23 = vld [vmem:[#allocation45_spill] sm:$0xff] }
 0x2d5   : > { %v1509_v29 = vsel %vm1508_vm13, %v4308_v51, %v1507_v18  ;;  %v1514_v17 = vmul.f32 %v2835_v49, %v4316_v24  ;;  %2840 = vrsqrt.f32 %v4380_v16  ;;  %vm1739_vm3 = vcmp.eq.f32.partialorder %v4327_v32, inf  ;;  %v4401_v51 = vpop.permute.xlu0 %1098 }
 0x2d6   : > { %v1512_v11 = vsel %vm1510_vm14, %v1511_v15, %v1509_v29  ;;  %v1733_v3 = vsel %vm1732_vm15, %v4310_v58, %v1731_v33  ;;  %vm1741_vm4 = vcmp.eq.f32.partialorder %v4327_v32, 0.0  ;;  %v4407_v19 = vmax.f32 %v1268_v20, 0.0 }
 0x2d7   : > { %v2837_v41 = vpop.eup %2836  ;;  %v1840_v0 = vsub.f32 0.0, %v1512_v11  ;;  %v1736_v10 = vsel %vm1734_vm0, %v1735_v54, %v1733_v3  ;;  %v1516_v26 = vsel %vm1515_vm1, %v4316_v24, %v1514_v17  ;;  %v1742_v7 = vand.u32 2147483648, %v4327_v32  ;;  %v4982_v3 = vld [vmem:[#allocation43_spill] sm:$0xff] }
 0x2d8   : > { %v1872_v34 = vsub.f32 0.0, %v1736_v10  ;;  %v1738_v9 = vmul.f32 %v2837_v41, %v4327_v32  ;;  %v1519_v58 = vsel %vm1517_vm2, %v1518_v36, %v1516_v26  ;;  %2842 = vrsqrt.f32 %v4386_v27  ;;  %v4981_v36 = vld [vmem:[#allocation27_spill] sm:$0xff] }
 0x2d9   : > { %1904 = vst [vmem:[%s3402_s15 + $0x98] sm:$0xff] %v1840_v0  ;;  %v4414_v5 = vmax.f32 %v1300_v50, 0.0  ;;  %v1841_v47 = vsub.f32 0.0, %v1519_v58  ;;  %2844 = vrsqrt.f32 %v4388_v22  ;;  %v1205_v1 = vmul.f32 2.0, %v3980_v46 }
 0x2da   : > { %1936 = vst [vmem:[%s3402_s15 + $0x198] sm:$0xff] %v1872_v34  ;;  %v1740_v14 = vsel %vm1739_vm3, %v4327_v32, %v1738_v9  ;;  %v2839_v35 = vpop.eup %2838  ;;  %v4422_v24 = vadd.f32 %v4975_v2, %v4401_v51  ;;  %vm1522_vm5 = vcmp.eq.f32.partialorder %v4353_v48, inf  ;;  %vm1524_vm6 = vcmp.eq.f32.partialorder %v4353_v48, 0.0 }
 0x2db   : > { %v1743_v15 = vsel %vm1741_vm4, %v1742_v7, %v1740_v14  ;;  %1905 = vst [vmem:[%s3402_s15 + $0xa0] sm:$0xff] %v1841_v47  ;;  %v1521_v57 = vmul.f32 %v2839_v35, %v4353_v48  ;;  %v1525_v63 = vand.u32 2147483648, %v4353_v48  ;;  %2846 = vrsqrt.f32 %v4407_v19 }
 0x2dc   : > { %v1873_v56 = vsub.f32 0.0, %v1743_v15  ;;  %vm1746_vm7 = vcmp.eq.f32.partialorder %v4380_v16, inf  ;;  %vm1748_vm8 = vcmp.eq.f32.partialorder %v4380_v16, 0.0  ;;  %v1749_v46 = vand.u32 2147483648, %v4380_v16 }
 0x2dd   : > { %2848 = vrsqrt.f32 %v4414_v5  ;;  %v1523_v32 = vsel %vm1522_vm5, %v4353_v48, %v1521_v57  ;;  %vm1529_vm9 = vcmp.eq.f32.partialorder %v4386_v27, inf  ;;  %vm1531_vm10 = vcmp.eq.f32.partialorder %v4386_v27, 0.0 }
 0x2de   : > { %1937 = vst [vmem:[%s3402_s15 + $0x1a0] sm:$0xff] %v1873_v56  ;;  %v1269_v31 = vsub.f32 %v4976_v25, %v1205_v1  ;;  %v1526_v55 = vsel %vm1524_vm6, %v1525_v63, %v1523_v32  ;;  %v1237_v62 = vmul.f32 2.0, %v3982_v61  ;;  %v1206_v53 = vmul.f32 2.0, %v3987_v44 }
 0x2df   : > { %v1238_v40 = vmul.f32 2.0, %v3989_v59  ;;  %v2841_v37 = vpop.eup %2840  ;;  %v1842_v54 = vsub.f32 0.0, %v1526_v55  ;;  %v1207_v48 = vmul.f32 2.0, %v3998_v60  ;;  %v1239_v43 = vmul.f32 2.0, %v4977_v8 }
 0x2e0   : > { %v4444_v12 = vmax.f32 %v1269_v31, 0.0  ;;  %v1745_v42 = vmul.f32 %v2841_v37, %v4380_v16  ;;  %v1301_v18 = vsub.f32 %v4978_v23, %v1237_v62  ;;  %v1270_v28 = vsub.f32 %v4979_v30, %v1206_v53  ;;  %v4983_v37 = vld [vmem:[#allocation28_spill] sm:$0xff] }
 0x2e1   : > { %v1302_v61 = vsub.f32 %v4980_v39, %v1238_v40  ;;  %1906 = vst [vmem:[%s3402_s15 + $0xa8] sm:$0xff] %v1842_v54  ;;  %v1532_v44 = vand.u32 2147483648, %v4386_v27  ;;  %vm1753_vm11 = vcmp.eq.f32.partialorder %v4388_v22, inf  ;;  %vm1755_vm12 = vcmp.eq.f32.partialorder %v4388_v22, 0.0 }
 0x2e2   : > { %2850 = vrsqrt.f32 %v4444_v12  ;;  %v2843_v59 = vpop.eup %2842  ;;  %v1747_v60 = vsel %vm1746_vm7, %v4380_v16, %v1745_v42  ;;  %v1756_v20 = vand.u32 2147483648, %v4388_v22  ;;  %v4461_v13 = vmax.f32 %v1301_v18, 0.0 }
 0x2e3   : > { %v4463_v50 = vmax.f32 %v1270_v28, 0.0  ;;  %v2845_v33 = vpop.eup %2844  ;;  %v1750_v49 = vsel %vm1748_vm8, %v1749_v46, %v1747_v60  ;;  %v1528_v29 = vmul.f32 %v2843_v59, %v4386_v27  ;;  %v1271_v11 = vsub.f32 %v4981_v36, %v1207_v48  ;;  %v4984_v48 = vld [vmem:[#allocation44_spill] sm:$0xff]  ;;  %v1104_v28 = vpop.permute.xlu1 %1103 }
 0x2e4   : > { %v1303_v17 = vsub.f32 %v4982_v3, %v1239_v43  ;;  %v1874_v41 = vsub.f32 0.0, %v1750_v49  ;;  %v1752_v0 = vmul.f32 %v2845_v33, %v4388_v22  ;;  %2852 = vrsqrt.f32 %v4461_v13 }
 0x2e5   : > { %v4472_v10 = vmax.f32 %v1302_v61, 0.0  ;;  %v2847_v34 = vpop.eup %2846  ;;  %v1530_v26 = vsel %vm1529_vm9, %v4386_v27, %v1528_v29  ;;  %vm1536_vm13 = vcmp.eq.f32.partialorder %v4407_v19, inf  ;;  %vm1538_vm14 = vcmp.eq.f32.partialorder %v4407_v19, 0.0 }
 0x2e6   : > { %2854 = vrsqrt.f32 %v4463_v50  ;;  %1938 = vst [vmem:[%s3402_s15 + $0x1a8] sm:$0xff] %v1874_v41  ;;  %v1533_v9 = vsel %vm1531_vm10, %v1532_v44, %v1530_v26  ;;  %v1754_v58 = vsel %vm1753_vm11, %v4388_v22, %v1752_v0  ;;  %v1535_v7 = vmul.f32 %v2847_v34, %v4407_v19  ;;  %v4986_v0 = vld [vmem:[#allocation18_spill] sm:$0xff] }
 0x2e7   : > { %v2849_v16 = vpop.eup %2848  ;;  %v1539_v47 = vand.u32 2147483648, %v4407_v19  ;;  %v1843_v14 = vsub.f32 0.0, %v1533_v9  ;;  %v1757_v1 = vsel %vm1755_vm12, %v1756_v20, %v1754_v58  ;;  %vm1760_vm15 = vcmp.eq.f32.partialorder %v4414_v5, inf  ;;  %v4985_v20 = vld [vmem:[#allocation33_spill] sm:$0xff]  ;;  %v4987_v9 = vld [vmem:[#allocation34_spill] sm:$0xff] }
 0x2e8   : > { %v1759_v35 = vmul.f32 %v2849_v16, %v4414_v5  ;;  %v1875_v15 = vsub.f32 0.0, %v1757_v1  ;;  %v1537_v27 = vsel %vm1536_vm13, %v4407_v19, %v1535_v7  ;;  %v1763_v56 = vand.u32 2147483648, %v4414_v5  ;;  %v4988_v7 = vld [vmem:[#allocation49_spill] sm:$0xff] }
 0x2e9   : > { %2856 = vrsqrt.f32 %v4472_v10  ;;  %1907 = vst [vmem:[%s3402_s15 + $0xb0] sm:$0xff] %v1843_v14  ;;  %v1540_v57 = vsel %vm1538_vm14, %v1539_v47, %v1537_v27  ;;  %vm1762_vm0 = vcmp.eq.f32.partialorder %v4414_v5, 0.0  ;;  %vm1543_vm1 = vcmp.eq.f32.partialorder %v4444_v12, inf }
 0x2ea   : > { %v1761_v63 = vsel %vm1760_vm15, %v4414_v5, %v1759_v35  ;;  %1939 = vst [vmem:[%s3402_s15 + $0x1b0] sm:$0xff] %v1875_v15  ;;  %v1844_v22 = vsub.f32 0.0, %v1540_v57  ;;  %vm1545_vm2 = vcmp.eq.f32.partialorder %v4444_v12, 0.0  ;;  %v4503_v32 = vmax.f32 %v1271_v11, 0.0 }
 0x2eb   : > { %v1764_v46 = vsel %vm1762_vm0, %v1763_v56, %v1761_v63  ;;  %v4505_v55 = vmax.f32 %v1303_v17, 0.0  ;;  %v1208_v19 = vmul.f32 2.0, %v4012_v38  ;;  %v1240_v62 = vmul.f32 2.0, %v4014_v21 }
 0x2ec   : > { %v2851_v25 = vpop.eup %2850  ;;  %v1876_v31 = vsub.f32 0.0, %v1764_v46  ;;  %1908 = vst [vmem:[%s3402_s15 + $0xb8] sm:$0xff] %v1844_v22  ;;  %v1546_v53 = vand.u32 2147483648, %v4444_v12  ;;  %vm1767_vm3 = vcmp.eq.f32.partialorder %v4461_v13, inf  ;;  %2858 = vrsqrt.f32 %v4503_v32 }
 0x2ed   : > { %v1542_v5 = vmul.f32 %v2851_v25, %v4444_v12  ;;  %vm1769_vm4 = vcmp.eq.f32.partialorder %v4461_v13, 0.0  ;;  %v1770_v40 = vand.u32 2147483648, %v4461_v13  ;;  %vm1550_vm5 = vcmp.eq.f32.partialorder %v4463_v50, inf }
 0x2ee   : > { %1940 = vst [vmem:[%s3402_s15 + $0x1b8] sm:$0xff] %v1876_v31  ;;  %2860 = vrsqrt.f32 %v4505_v55  ;;  %v2853_v38 = vpop.eup %2852  ;;  %vm1552_vm6 = vcmp.eq.f32.partialorder %v4463_v50, 0.0  ;;  %v1272_v54 = vsub.f32 %v4983_v37, %v1208_v19  ;;  %v1304_v8 = vsub.f32 %v4984_v48, %v1240_v62  ;;  %v4989_v31 = vld [vmem:[#allocation50_spill] sm:$0xff]  ;;  %v4990_v62 = vld [vmem:[#allocation51_spill] sm:$0xff] }
 0x2ef   : > { %v1544_v21 = vsel %vm1543_vm1, %v4444_v12, %v1542_v5  ;;  %v1766_v23 = vmul.f32 %v2853_v38, %v4461_v13  ;;  %v1209_v18 = vmul.f32 2.0, %v4040_v4  ;;  %v1241_v30 = vmul.f32 2.0, %v4042_v6 }
 0x2f0   : > { %v2855_v43 = vpop.eup %2854  ;;  %v1547_v42 = vsel %vm1545_vm2, %v1546_v53, %v1544_v21  ;;  %v4531_v44 = vmax.f32 %v1272_v54, 0.0  ;;  %v4533_v59 = vmax.f32 %v1304_v8, 0.0  ;;  %v1553_v12 = vand.u32 2147483648, %v4463_v50  ;;  %v4991_v21 = vld [vmem:[#allocation31_spill] sm:$0xff] }
 0x2f1   : > { %v1845_v39 = vsub.f32 0.0, %v1547_v42  ;;  %v1549_v61 = vmul.f32 %v2855_v43, %v4463_v50  ;;  %v1768_v60 = vsel %vm1767_vm3, %v4461_v13, %v1766_v23  ;;  %v1273_v33 = vsub.f32 %v4985_v20, %v1209_v18 }
 0x2f2   : > { %v1305_v4 = vsub.f32 %v4422_v24, %v1241_v30  ;;  %v1771_v49 = vsel %vm1769_vm4, %v1770_v40, %v1768_v60  ;;  %2862 = vrsqrt.f32 %v4531_v44  ;;  %v1210_v36 = vmul.f32 2.0, %v4047_v52 }
 0x2f3   : > { %v2857_v6 = vpop.eup %2856  ;;  %1909 = vst [vmem:[%s3402_s15 + $0xc0] sm:$0xff] %v1845_v39  ;;  %v1551_v29 = vsel %vm1550_vm5, %v4463_v50, %v1549_v61  ;;  %v4550_v11 = vadd.f32 %v4975_v2, %v1104_v28  ;;  %v1877_v3 = vsub.f32 0.0, %v1771_v49  ;;  %vm1774_vm7 = vcmp.eq.f32.partialorder %v4472_v10, inf }
 0x2f4   : > { %v1554_v24 = vsel %vm1552_vm6, %v1553_v12, %v1551_v29  ;;  %v1773_v17 = vmul.f32 %v2857_v6, %v4472_v10  ;;  %v1777_v41 = vand.u32 2147483648, %v4472_v10  ;;  %2864 = vrsqrt.f32 %v4533_v59  ;;  %v4993_v6 = vld [vmem:[#allocation52_spill] sm:$0xff] }
 0x2f5   : > { %v1846_v13 = vsub.f32 0.0, %v1554_v24  ;;  %v1178_v34 = vadd.f32 %v4986_v0, %v4401_v51  ;;  %1941 = vst [vmem:[%s3402_s15 + $0x1c0] sm:$0xff] %v1877_v3  ;;  %vm1776_vm8 = vcmp.eq.f32.partialorder %v4472_v10, 0.0  ;;  %v4563_v2 = vmax.f32 %v1273_v33, 0.0 }
 0x2f6   : > { %v1775_v52 = vsel %vm1774_vm7, %v4472_v10, %v1773_v17  ;;  %v2859_v50 = vpop.eup %2858  ;;  %v4566_v16 = vmax.f32 %v1305_v4, 0.0  ;;  %v1274_v58 = vsub.f32 %v4987_v9, %v1210_v36  ;;  %v1242_v47 = vmul.f32 2.0, %v4988_v7 }
 0x2f7   : > { %1910 = vst [vmem:[%s3402_s15 + $0xc8] sm:$0xff] %v1846_v13  ;;  %v1778_v26 = vsel %vm1776_vm8, %v1777_v41, %v1775_v52  ;;  %v1556_v51 = vmul.f32 %v2859_v50, %v4503_v32  ;;  %vm1557_vm9 = vcmp.eq.f32.partialorder %v4503_v32, inf  ;;  %2866 = vrsqrt.f32 %v4563_v2 }
 0x2f8   : > { %v2861_v14 = vpop.eup %2860  ;;  %v1878_v1 = vsub.f32 0.0, %v1778_v26  ;;  %vm1559_vm10 = vcmp.eq.f32.partialorder %v4503_v32, 0.0  ;;  %v1560_v10 = vand.u32 2147483648, %v4503_v32  ;;  %2868 = vrsqrt.f32 %v4566_v16 }
 0x2f9   : > { %v1780_v35 = vmul.f32 %v2861_v14, %v4505_v55  ;;  %v1558_v15 = vsel %vm1557_vm9, %v4503_v32, %v1556_v51  ;;  %vm1781_vm11 = vcmp.eq.f32.partialorder %v4505_v55, inf  ;;  %vm1783_vm12 = vcmp.eq.f32.partialorder %v4505_v55, 0.0 }
 0x2fa   : > { %1942 = vst [vmem:[%s3402_s15 + $0x1c8] sm:$0xff] %v1878_v1  ;;  %v1784_v27 = vand.u32 2147483648, %v4505_v55  ;;  %v1561_v56 = vsel %vm1559_vm10, %v1560_v10, %v1558_v15  ;;  %v4583_v63 = vmax.f32 %v1274_v58, 0.0  ;;  %v1306_v22 = vsub.f32 %v1178_v34, %v1242_v47 }
 0x2fb   : > { %v1782_v57 = vsel %vm1781_vm11, %v4505_v55, %v1780_v35  ;;  %v1847_v46 = vsub.f32 0.0, %v1561_v56  ;;  %v1211_v19 = vmul.f32 2.0, %v4989_v31  ;;  %v1243_v32 = vmul.f32 2.0, %v4990_v62 }
 0x2fc   : > { %v1785_v25 = vsel %vm1783_vm12, %v1784_v27, %v1782_v57  ;;  %v2863_v5 = vpop.eup %2862  ;;  %v1180_v53 = vadd.f32 %v4986_v0, %v1104_v28  ;;  %vm1564_vm13 = vcmp.eq.f32.partialorder %v4531_v44, inf  ;;  %2870 = vrsqrt.f32 %v4583_v63 }
 0x2fd   : > { %v1879_v40 = vsub.f32 0.0, %v1785_v25  ;;  %1911 = vst [vmem:[%s3402_s15 + $0xd0] sm:$0xff] %v1847_v46  ;;  %v1563_v55 = vmul.f32 %v2863_v5, %v4531_v44  ;;  %vm1566_vm14 = vcmp.eq.f32.partialorder %v4531_v44, 0.0  ;;  %v4593_v38 = vmax.f32 %v1306_v22, 0.0 }
 0x2fe   : > { %v1275_v37 = vsub.f32 %v4991_v21, %v1211_v19  ;;  %v2865_v54 = vpop.eup %2864  ;;  %v1567_v48 = vand.u32 2147483648, %v4531_v44  ;;  %vm1788_vm15 = vcmp.eq.f32.partialorder %v4533_v59, inf  ;;  %v1307_v8 = vsub.f32 %v4550_v11, %v1243_v32 }
 0x2ff   : > { %1943 = vst [vmem:[%s3402_s15 + $0x1d0] sm:$0xff] %v1879_v40  ;;  %v1212_v43 = vmul.f32 2.0, %v4067_v45  ;;  %v1565_v42 = vsel %vm1564_vm13, %v4531_v44, %v1563_v55  ;;  %v1787_v23 = vmul.f32 %v2865_v54, %v4533_v59  ;;  %vm1790_vm0 = vcmp.eq.f32.partialorder %v4533_v59, 0.0  ;;  %v4992_v44 = vld [vmem:[#allocation32_spill] sm:$0xff] }
 0x300   : > { %2872 = vrsqrt.f32 %v4593_v38  ;;  %v1568_v18 = vsel %vm1566_vm14, %v1567_v48, %v1565_v42  ;;  %v1791_v30 = vand.u32 2147483648, %v4533_v59  ;;  %vm1571_vm1 = vcmp.eq.f32.partialorder %v4563_v2, inf }
 0x301   : > { %v1339_v28 = vmax.f32 %v1275_v37, 0.0  ;;  %v2867_v39 = vpop.eup %2866  ;;  %v1848_v61 = vsub.f32 0.0, %v1568_v18  ;;  %v1789_v60 = vsel %vm1788_vm15, %v4533_v59, %v1787_v23  ;;  %v4608_v45 = vmax.f32 %v1307_v8, 0.0 }
 0x302   : > { %v1276_v12 = vsub.f32 %v4992_v44, %v1212_v43  ;;  %v2869_v20 = vpop.eup %2868  ;;  %v1792_v33 = vsel %vm1790_vm0, %v1791_v30, %v1789_v60  ;;  %v1570_v4 = vmul.f32 %v2867_v39, %v4563_v2  ;;  %v1244_v49 = vmul.f32 2.0, %v4993_v6  ;;  %v2053_v30 = vld [vmem:[%s3402_s15] sm:$0xff] (!%p2429_p4)  ;;  %v2063_v6 = vld [vmem:[%s3402_s15 + $0x50] sm:$0xff] (!%p2429_p4) }
 0x303   : > { %2874 = vrsqrt.f32 %v1339_v28  ;;  %1912 = vst [vmem:[%s3402_s15 + $0xd8] sm:$0xff] %v1848_v61  ;;  %v1880_v29 = vsub.f32 0.0, %v1792_v33  ;;  %vm1573_vm2 = vcmp.eq.f32.partialorder %v4563_v2, 0.0  ;;  %v1574_v36 = vand.u32 2147483648, %v4563_v2  ;;  %v2055_v61 = vld [vmem:[%s3402_s15 + $0x10] sm:$0xff] (!%p2429_p4) }
 0x304   : > { %v1794_v59 = vmul.f32 %v2869_v20, %v4566_v16  ;;  %v1572_v11 = vsel %vm1571_vm1, %v4563_v2, %v1570_v4  ;;  %vm1795_vm3 = vcmp.eq.f32.partialorder %v4566_v16, inf  ;;  %v1798_v3 = vand.u32 2147483648, %v4566_v16  ;;  %v2061_v4 = vld [vmem:[%s3402_s15 + $0x40] sm:$0xff] (!%p2429_p4) }
 0x305   : > { %2876 = vrsqrt.f32 %v4608_v45  ;;  %1944 = vst [vmem:[%s3402_s15 + $0x1d8] sm:$0xff] %v1880_v29  ;;  %v1575_v24 = vsel %vm1573_vm2, %v1574_v36, %v1572_v11  ;;  %vm1797_vm4 = vcmp.eq.f32.partialorder %v4566_v16, 0.0  ;;  %v1340_v13 = vmax.f32 %v1276_v12, 0.0  ;;  %v2059_v12 = vld [vmem:[%s3402_s15 + $0x30] sm:$0xff] (!%p2429_p4)  ;;  %v2065_v29 = vld [vmem:[%s3402_s15 + $0x60] sm:$0xff] (!%p2429_p4) }
 0x306   : > { %v1796_v17 = vsel %vm1795_vm3, %v4566_v16, %v1794_v59  ;;  %v2871_v41 = vpop.eup %2870  ;;  %v1849_v0 = vsub.f32 0.0, %v1575_v24  ;;  %v1308_v52 = vsub.f32 %v1180_v53, %v1244_v49  ;;  %vm1578_vm5 = vcmp.eq.f32.partialorder %v4583_v63, inf }
 0x307   : > { %v1799_v34 = vsel %vm1797_vm4, %v1798_v3, %v1796_v17  ;;  %v1577_v50 = vmul.f32 %v2871_v41, %v4583_v63  ;;  %2878 = vrsqrt.f32 %v1340_v13  ;;  %v1581_v26 = vand.u32 2147483648, %v4583_v63 }
 0x308   : > { %v1881_v2 = vsub.f32 0.0, %v1799_v34  ;;  %1913 = vst [vmem:[%s3402_s15 + $0xe0] sm:$0xff] %v1849_v0  ;;  %v1372_v9 = vmax.f32 %v1308_v52, 0.0  ;;  %vm1580_vm6 = vcmp.eq.f32.partialorder %v4583_v63, 0.0  ;;  %vm1802_vm7 = vcmp.eq.f32.partialorder %v4593_v38, inf  ;;  %v2067_v0 = vld [vmem:[%s3402_s15 + $0x70] sm:$0xff] (!%p2429_p4) }
 0x309   : > { %v1579_v16 = vsel %vm1578_vm5, %v4583_v63, %v1577_v50  ;;  %v1805_v1 = vand.u32 2147483648, %v4593_v38  ;;  %vm1804_vm8 = vcmp.eq.f32.partialorder %v4593_v38, 0.0  ;;  %vm1585_vm9 = vcmp.eq.f32.partialorder %v1339_v28, inf  ;;  %v2069_v34 = vld [vmem:[%s3402_s15 + $0x80] sm:$0xff] (!%p2429_p4)  ;;  %v2071_v50 = vld [vmem:[%s3402_s15 + $0x90] sm:$0xff] (!%p2429_p4) }
 0x30a   : > { %v2873_v58 = vpop.eup %2872  ;;  %1945 = vst [vmem:[%s3402_s15 + $0x1e0] sm:$0xff] %v1881_v2  ;;  %v1582_v7 = vsel %vm1580_vm6, %v1581_v26, %v1579_v16  ;;  %2880 = vrsqrt.f32 %v1372_v9  ;;  %v1588_v57 = vand.u32 2147483648, %v1339_v28  ;;  %vm1587_vm10 = vcmp.eq.f32.partialorder %v1339_v28, 0.0  ;;  %v2075_v16 = vld [vmem:[%s3402_s15 + $0xb0] sm:$0xff] (!%p2429_p4) }
 0x30b   : > { %v1801_v47 = vmul.f32 %v2873_v58, %v4593_v38  ;;  %v1850_v14 = vsub.f32 0.0, %v1582_v7  ;;  %vm1809_vm11 = vcmp.eq.f32.partialorder %v4608_v45, inf  ;;  %v1812_v25 = vand.u32 2147483648, %v4608_v45 }
 0x30c   : > { %vm1811_vm12 = vcmp.eq.f32.partialorder %v4608_v45, 0.0  ;;  %vm1592_vm13 = vcmp.eq.f32.partialorder %v1340_v13, inf  ;;  %v1595_v40 = vand.u32 2147483648, %v1340_v13  ;;  %vm1594_vm14 = vcmp.eq.f32.partialorder %v1340_v13, 0.0 }
 0x30d   : > { %v2875_v51 = vpop.eup %2874  ;;  %v1803_v10 = vsel %vm1802_vm7, %v4593_v38, %v1801_v47  ;;  %1914 = vst [vmem:[%s3402_s15 + $0xe8] sm:$0xff] %v1850_v14  ;;  %vm1816_vm15 = vcmp.eq.f32.partialorder %v1372_v9, inf  ;;  %v1819_v48 = vand.u32 2147483648, %v1372_v9  ;;  %vm1818_vm0 = vcmp.eq.f32.partialorder %v1372_v9, 0.0 }
 0x30e   : > { %v1806_v35 = vsel %vm1804_vm8, %v1805_v1, %v1803_v10  ;;  %v1584_v15 = vmul.f32 %v2875_v51, %v1339_v28  ;;  %v4994_v23 = vlaneseq (!%p2429_p4)  ;;  %v2077_v51 = vld [vmem:[%s3402_s15 + $0xc0] sm:$0xff] (!%p2429_p4)  ;;  %v2079_v10 = vld [vmem:[%s3402_s15 + $0xd0] sm:$0xff] (!%p2429_p4) }
 0x30f   : > { %v2877_v27 = vpop.eup %2876  ;;  %v1882_v56 = vsub.f32 0.0, %v1806_v35  ;;  %v2081_v35 = vld [vmem:[%s3402_s15 + $0xe0] sm:$0xff] (!%p2429_p4) }
 0x310   : > { %v1586_v63 = vsel %vm1585_vm9, %v1339_v28, %v1584_v15  ;;  %v1808_v22 = vmul.f32 %v2877_v27, %v4608_v45  ;;  %v4652_v18 = vand.u32 (!%p2429_p4), 127, %v4994_v23  ;;  %v4995_v28 = vld [vmem:[#allocation16_spill] sm:$0xff] (!%p2429_p4) }
 0x311   : > { %1946 = vst [vmem:[%s3402_s15 + $0x1e8] sm:$0xff] %v1882_v56  ;;  %v1589_v46 = vsel %vm1587_vm10, %v1588_v57, %v1586_v63  ;;  %v2879_v31 = vpop.eup %2878  ;;  %v1955_v39 = vadd.s32 (!%p2429_p4), 8, %v4995_v28  ;;  %v1956_v60 = vadd.s32 (!%p2429_p4), 16, %v4995_v28  ;;  %v1957_v44 = vadd.s32 (!%p2429_p4), 24, %v4995_v28 }
 0x312   : > { %v1851_v19 = vsub.f32 0.0, %v1589_v46  ;;  %v1810_v62 = vsel %vm1809_vm11, %v4608_v45, %v1808_v22  ;;  %v1591_v5 = vmul.f32 %v2879_v31, %v1340_v13  ;;  %v2057_v45 = vld [vmem:[%s3402_s15 + $0x20] sm:$0xff] (!%p2429_p4)  ;;  %v1958_v20 = vadd.s32 (!%p2429_p4), 32, %v4995_v28 }
 0x313   : > { %v1813_v32 = vsel %vm1811_vm12, %v1812_v25, %v1810_v62  ;;  %v1959_v33 = vadd.s32 (!%p2429_p4), 40, %v4995_v28  ;;  %vm1989_vm1 = vcmp.eq.s32.totalorder (!%p2429_p4), %v4995_v28, %v4652_v18  ;;  %vm1991_vm2 = vcmp.eq.s32.totalorder (!%p2429_p4), %v1955_v39, %v4652_v18 }
 0x314   : > { %1915 = vst [vmem:[%s3402_s15 + $0xf0] sm:$0xff] %v1851_v19  ;;  %v1883_v53 = vsub.f32 0.0, %v1813_v32  ;;  %v2881_v55 = vpop.eup %2880  ;;  %v1593_v38 = vsel %vm1592_vm13, %v1340_v13, %v1591_v5  ;;  %vm1993_vm3 = vcmp.eq.s32.totalorder (!%p2429_p4), %v1956_v60, %v4652_v18  ;;  %v1960_v49 = vadd.s32 (!%p2429_p4), 48, %v4995_v28  ;;  %v2086_v19 = vld [vmem:[%s3402_s15 + $0x108] sm:$0xff] (!%p2429_p4) }
 0x315   : > { %v1596_v21 = vsel %vm1594_vm14, %v1595_v40, %v1593_v38  ;;  %v1815_v37 = vmul.f32 %v2881_v55, %v1372_v9  ;;  %1952 = sbr.rel (%p2429_p4) target bundleno = 815 (0x32f), region = 48  ;;  %v2117_v36 = vsel (!%p2429_p4), %vm1989_vm1, 0.0, %v2053_v30  ;;  %v2119_v59 = vsel (!%p2429_p4), %vm1991_vm2, 0.0, %v2055_v61  ;;  %v2090_v55 = vld [vmem:[%s3402_s15 + $0x128] sm:$0xff] (!%p2429_p4) }
 0x316   : > { %1947 = vst [vmem:[%s3402_s15 + $0x1f0] sm:$0xff] %v1883_v53  ;;  %v1852_v54 = vsub.f32 0.0, %v1596_v21  ;;  %v2121_v11 = vsel (!%p2429_p4), %vm1993_vm3, 0.0, %v2057_v45  ;;  %vm1995_vm4 = vcmp.eq.s32.totalorder (!%p2429_p4), %v1957_v44, %v4652_v18  ;;  %2181 = vst [vmem:[%s3402_s15] sm:$0xff] (!%p2429_p4), %v2117_v36  ;;  %vm1997_vm5 = vcmp.eq.s32.totalorder (!%p2429_p4), %v1958_v20, %v4652_v18  ;;  %v2088_v53 = vld [vmem:[%s3402_s15 + $0x118] sm:$0xff] (!%p2429_p4)  ;;  %v2098_v61 = vld [vmem:[%s3402_s15 + $0x168] sm:$0xff] (!%p2429_p4) }
 0x317   : > { %v1817_v8 = vsel %vm1816_vm15, %v1372_v9, %v1815_v37  ;;  %2183 = vst [vmem:[%s3402_s15 + $0x10] sm:$0xff] (!%p2429_p4), %v2119_v59  ;;  %2185 = vst [vmem:[%s3402_s15 + $0x20] sm:$0xff] (!%p2429_p4), %v2121_v11  ;;  %v2123_v3 = vsel (!%p2429_p4), %vm1995_vm4, 0.0, %v2059_v12  ;;  %vm1999_vm6 = vcmp.eq.s32.totalorder (!%p2429_p4), %v1959_v33, %v4652_v18  ;;  %vm2001_vm7 = vcmp.eq.s32.totalorder (!%p2429_p4), %v1960_v49, %v4652_v18  ;;  %v2073_v9 = vld [vmem:[%s3402_s15 + $0xa0] sm:$0xff] (!%p2429_p4)  ;;  %v2092_v21 = vld [vmem:[%s3402_s15 + $0x138] sm:$0xff] (!%p2429_p4) }
 0x318   : > { %1916 = vst [vmem:[%s3402_s15 + $0xf8] sm:$0xff] %v1852_v54  ;;  %v1820_v43 = vsel %vm1818_vm0, %v1819_v48, %v1817_v8  ;;  %2187 = vst [vmem:[%s3402_s15 + $0x30] sm:$0xff] (!%p2429_p4), %v2123_v3  ;;  %v2125_v24 = vsel (!%p2429_p4), %vm1997_vm5, 0.0, %v2061_v4  ;;  %v2127_v17 = vsel (!%p2429_p4), %vm1999_vm6, 0.0, %v2063_v6  ;;  %v2129_v13 = vsel (!%p2429_p4), %vm2001_vm7, 0.0, %v2065_v29  ;;  %v2094_v8 = vld [vmem:[%s3402_s15 + $0x148] sm:$0xff] (!%p2429_p4) }
 0x319   : > { %v1884_v42 = vsub.f32 0.0, %v1820_v43  ;;  %v1961_v41 = vadd.s32 (!%p2429_p4), 56, %v4995_v28  ;;  %2189 = vst [vmem:[%s3402_s15 + $0x40] sm:$0xff] (!%p2429_p4), %v2125_v24  ;;  %2191 = vst [vmem:[%s3402_s15 + $0x50] sm:$0xff] (!%p2429_p4), %v2127_v17  ;;  %v1962_v52 = vadd.s32 (!%p2429_p4), 64, %v4995_v28  ;;  %v1963_v2 = vadd.s32 (!%p2429_p4), 72, %v4995_v28 }
 0x31a   : > { %2193 = vst [vmem:[%s3402_s15 + $0x60] sm:$0xff] (!%p2429_p4), %v2129_v13  ;;  %v1964_v26 = vadd.s32 (!%p2429_p4), 80, %v4995_v28  ;;  %v1965_v58 = vadd.s32 (!%p2429_p4), 88, %v4995_v28  ;;  %v1966_v7 = vadd.s32 (!%p2429_p4), 96, %v4995_v28  ;;  %v1967_v47 = vadd.s32 (!%p2429_p4), 104, %v4995_v28  ;;  %v2096_v43 = vld [vmem:[%s3402_s15 + $0x158] sm:$0xff] (!%p2429_p4) }
 0x31b   : > { %1948 = vst [vmem:[%s3402_s15 + $0x1f8] sm:$0xff] %v1884_v42  ;;  %vm2003_vm8 = vcmp.eq.s32.totalorder (!%p2429_p4), %v1961_v41, %v4652_v18  ;;  %v1968_v14 = vadd.s32 (!%p2429_p4), 112, %v4995_v28  ;;  %vm2005_vm9 = vcmp.eq.s32.totalorder (!%p2429_p4), %v1962_v52, %v4652_v18  ;;  %vm2007_vm10 = vcmp.eq.s32.totalorder (!%p2429_p4), %v1963_v2, %v4652_v18  ;;  %v2083_v31 = vld [vmem:[%s3402_s15 + $0xf0] sm:$0xff] (!%p2429_p4)  ;;  %v2100_v12 = vld [vmem:[%s3402_s15 + $0x178] sm:$0xff] (!%p2429_p4)  ;;  %v2102_v33 = vld [vmem:[%s3402_s15 + $0x188] sm:$0xff] (!%p2429_p4) }
 0x31c   : > { %v2131_v1 = vsel %vm2003_vm8, 0.0, %v2067_v0  ;;  %vm2009_vm11 = vcmp.eq.s32.totalorder %v1964_v26, %v4652_v18  ;;  %v2133_v15 = vsel %vm2005_vm9, 0.0, %v2069_v34  ;;  %v2135_v27 = vsel %vm2007_vm10, 0.0, %v2071_v50  ;;  %v2104_v6 = vld [vmem:[%s3402_s15 + $0x198] sm:$0xff]  ;;  %v2106_v29 = vld [vmem:[%s3402_s15 + $0x1a8] sm:$0xff] }
 0x31d   : > { %2195 = vst [vmem:[%s3402_s15 + $0x70] sm:$0xff] %v2131_v1  ;;  %v2137_v56 = vsel %vm2009_vm11, 0.0, %v2073_v9  ;;  %vm2011_vm12 = vcmp.eq.s32.totalorder %v1965_v58, %v4652_v18  ;;  %2197 = vst [vmem:[%s3402_s15 + $0x80] sm:$0xff] %v2133_v15  ;;  %vm2013_vm13 = vcmp.eq.s32.totalorder %v1966_v7, %v4652_v18  ;;  %vm2015_vm14 = vcmp.eq.s32.totalorder %v1967_v47, %v4652_v18  ;;  %v2108_v11 = vld [vmem:[%s3402_s15 + $0x1b8] sm:$0xff]  ;;  %v2110_v24 = vld [vmem:[%s3402_s15 + $0x1c8] sm:$0xff] }
 0x31e   : > { %2199 = vst [vmem:[%s3402_s15 + $0x90] sm:$0xff] %v2135_v27  ;;  %2201 = vst [vmem:[%s3402_s15 + $0xa0] sm:$0xff] %v2137_v56  ;;  %v2139_v57 = vsel %vm2011_vm12, 0.0, %v2075_v16  ;;  %vm2017_vm15 = vcmp.eq.s32.totalorder %v1968_v14, %v4652_v18  ;;  %v2141_v63 = vsel %vm2013_vm13, 0.0, %v2077_v51  ;;  %v2143_v22 = vsel %vm2015_vm14, 0.0, %v2079_v10  ;;  %v2112_v50 = vld [vmem:[%s3402_s15 + $0x1d8] sm:$0xff] }
 0x31f   : > { %2203 = vst [vmem:[%s3402_s15 + $0xb0] sm:$0xff] %v2139_v57  ;;  %v2145_v46 = vsel %vm2017_vm15, 0.0, %v2081_v35  ;;  %v1969_v25 = vadd.s32 120, %v4995_v28  ;;  %2205 = vst [vmem:[%s3402_s15 + $0xc0] sm:$0xff] %v2141_v63  ;;  %v1970_v62 = vadd.s32 128, %v4995_v28  ;;  %v4719_v32 = vadd.s32 128, %v4652_v18 }
 0x320   : > { %2207 = vst [vmem:[%s3402_s15 + $0xd0] sm:$0xff] %v2143_v22  ;;  %2209 = vst [vmem:[%s3402_s15 + $0xe0] sm:$0xff] %v2145_v46  ;;  %v1971_v5 = vadd.s32 136, %v4995_v28  ;;  %v1972_v40 = vadd.s32 144, %v4995_v28  ;;  %v1973_v38 = vadd.s32 152, %v4995_v28  ;;  %v1974_v37 = vadd.s32 160, %v4995_v28 }
 0x321   : > { %vm2019_vm0 = vcmp.eq.s32.totalorder %v1969_v25, %v4652_v18  ;;  %v1975_v54 = vadd.s32 168, %v4995_v28  ;;  %vm2022_vm1 = vcmp.eq.s32.totalorder %v1970_v62, %v4719_v32  ;;  %v1976_v39 = vadd.s32 176, %v4995_v28  ;;  %v2114_v9 = vld [vmem:[%s3402_s15 + $0x1e8] sm:$0xff] }
 0x322   : > { %v2147_v48 = vsel %vm2019_vm0, 0.0, %v2083_v31  ;;  %vm2024_vm2 = vcmp.eq.s32.totalorder %v1971_v5, %v4719_v32  ;;  %vm2026_vm3 = vcmp.eq.s32.totalorder %v1972_v40, %v4719_v32  ;;  %v2150_v42 = vsel %vm2022_vm1, 0.0, %v2086_v19  ;;  %v2116_v16 = vld [vmem:[%s3402_s15 + $0x1f8] sm:$0xff] }
 0x323   : > { %2211 = vst [vmem:[%s3402_s15 + $0xf0] sm:$0xff] %v2147_v48  ;;  %v2152_v23 = vsel %vm2024_vm2, 0.0, %v2088_v53  ;;  %v2154_v18 = vsel %vm2026_vm3, 0.0, %v2090_v55  ;;  %vm2028_vm4 = vcmp.eq.s32.totalorder %v1973_v38, %v4719_v32  ;;  %2214 = vst [vmem:[%s3402_s15 + $0x108] sm:$0xff] %v2150_v42  ;;  %vm2030_vm5 = vcmp.eq.s32.totalorder %v1974_v37, %v4719_v32 }
 0x324   : > { %2216 = vst [vmem:[%s3402_s15 + $0x118] sm:$0xff] %v2152_v23  ;;  %2218 = vst [vmem:[%s3402_s15 + $0x128] sm:$0xff] %v2154_v18  ;;  %v2156_v30 = vsel %vm2028_vm4, 0.0, %v2092_v21  ;;  %vm2032_vm6 = vcmp.eq.s32.totalorder %v1975_v54, %v4719_v32  ;;  %v2158_v60 = vsel %vm2030_vm5, 0.0, %v2094_v8  ;;  %v1977_v44 = vadd.s32 184, %v4995_v28 }
 0x325   : > { %2220 = vst [vmem:[%s3402_s15 + $0x138] sm:$0xff] %v2156_v30  ;;  %v2160_v45 = vsel %vm2032_vm6, 0.0, %v2096_v43  ;;  %v1978_v20 = vadd.s32 192, %v4995_v28  ;;  %2222 = vst [vmem:[%s3402_s15 + $0x148] sm:$0xff] %v2158_v60  ;;  %vm2034_vm7 = vcmp.eq.s32.totalorder %v1976_v39, %v4719_v32  ;;  %v1979_v4 = vadd.s32 200, %v4995_v28 }
 0x326   : > { %2224 = vst [vmem:[%s3402_s15 + $0x158] sm:$0xff] %v2160_v45  ;;  %v1980_v49 = vadd.s32 208, %v4995_v28  ;;  %v1981_v36 = vadd.s32 216, %v4995_v28  ;;  %v2162_v59 = vsel %vm2034_vm7, 0.0, %v2098_v61  ;;  %vm2036_vm8 = vcmp.eq.s32.totalorder %v1977_v44, %v4719_v32 }
 0x327   : > { %vm2038_vm9 = vcmp.eq.s32.totalorder %v1978_v20, %v4719_v32  ;;  %v1982_v3 = vadd.s32 224, %v4995_v28  ;;  %2226 = vst [vmem:[%s3402_s15 + $0x168] sm:$0xff] %v2162_v59  ;;  %v2164_v17 = vsel %vm2036_vm8, 0.0, %v2100_v12  ;;  %vm2040_vm10 = vcmp.eq.s32.totalorder %v1979_v4, %v4719_v32 }
 0x328   : > { %v2166_v13 = vsel %vm2038_vm9, 0.0, %v2102_v33  ;;  %vm2042_vm11 = vcmp.eq.s32.totalorder %v1980_v49, %v4719_v32  ;;  %2228 = vst [vmem:[%s3402_s15 + $0x178] sm:$0xff] %v2164_v17  ;;  %v2168_v41 = vsel %vm2040_vm10, 0.0, %v2104_v6  ;;  %vm2044_vm12 = vcmp.eq.s32.totalorder %v1981_v36, %v4719_v32 }
 0x329   : > { %2230 = vst [vmem:[%s3402_s15 + $0x188] sm:$0xff] %v2166_v13  ;;  %v2170_v0 = vsel %vm2042_vm11, 0.0, %v2106_v29  ;;  %vm2046_vm13 = vcmp.eq.s32.totalorder %v1982_v3, %v4719_v32  ;;  %2232 = vst [vmem:[%s3402_s15 + $0x198] sm:$0xff] %v2168_v41  ;;  %v2172_v34 = vsel %vm2044_vm12, 0.0, %v2108_v11  ;;  %v1983_v2 = vadd.s32 232, %v4995_v28 }
 0x32a   : > { %2234 = vst [vmem:[%s3402_s15 + $0x1a8] sm:$0xff] %v2170_v0  ;;  %v2174_v52 = vsel %vm2046_vm13, 0.0, %v2110_v24  ;;  %v1984_v26 = vadd.s32 240, %v4995_v28  ;;  %2236 = vst [vmem:[%s3402_s15 + $0x1b8] sm:$0xff] %v2172_v34  ;;  %v1985_v58 = vadd.s32 248, %v4995_v28 }
 0x32b   : > { %2238 = vst [vmem:[%s3402_s15 + $0x1c8] sm:$0xff] %v2174_v52  ;;  %vm2048_vm14 = vcmp.eq.s32.totalorder %v1983_v2, %v4719_v32 }
 0x32c   : > { %vm2050_vm15 = vcmp.eq.s32.totalorder %v1984_v26, %v4719_v32  ;;  %v2176_v7 = vsel %vm2048_vm14, 0.0, %v2112_v50  ;;  %vm2052_vm0 = vcmp.eq.s32.totalorder %v1985_v58, %v4719_v32 }
 0x32d   : > { %v2178_v47 = vsel %vm2050_vm15, 0.0, %v2114_v9  ;;  %2240 = vst [vmem:[%s3402_s15 + $0x1d8] sm:$0xff] %v2176_v7  ;;  %v2180_v14 = vsel %vm2052_vm0, 0.0, %v2116_v16 }
 0x32e   : > { %2242 = vst [vmem:[%s3402_s15 + $0x1e8] sm:$0xff] %v2178_v47  ;;  %2244 = vst [vmem:[%s3402_s15 + $0x1f8] sm:$0xff] %v2180_v14 }
 0x32f PF: > { %s2439_s21 = sshll.u32 %s3080_s22, 7  ;;  %s2262_s23 = sshll.u32 %s3402_s15, 4  ;;  %s4788_s23 = int_to_ptr.vmem [resolvable:$true] %s2262_s23 }
 0x330   : > { %s2259_s18 = sadd.s32 %s2439_s21, %s3390_s11  ;;  %s4996_s24 = sld [smem:[#allocation54_spill]] }
 0x331   : > { %s2434_s9 = sshll.u32 %s2259_s18, 7  ;;  %s4797_s26 = scalar_lea.sflag [#allocation5], %s254_s4 }
 0x332   : > { %s2942_s3 = scalar_lea.vmem %s4788_s23, 8192  ;;  %p4998_p3 = scmp.ne.s32.totalorder %s4910_s7, 0 }
 0x333   : > { %p2943_p12 = scmp.ne.s32.totalorder %s4788_s23, %s2942_s3  ;;  %s3099_s22 = smov [#allocation8]  }
 0x334   : > { %s2946_s11 = sshll.u32 %s3099_s22, 4  ;;  %s2947_s11 = int_to_ptr.vmem [resolvable:$false] %s2946_s11 }
 0x335   : > { %p2944_p2 = pnand %p2943_p12, %p4998_p3  ;;  %s2948_s15 = scalar_lea.vmem %s2947_s11, 16384 }
 0x336   : > { %s4997_s27 = smov %s4996_s24  ;;  %s4793_s29 = scalar_lea.hbm %s4996_s24, %s2434_s9 }
 0x337   : > { %p2945_p11 = pneg %p2944_p2  ;;  %p2949_p8 = scmp.lt.s32.totalorder %s4788_s23, %s2947_s11 }
 0x338   : > { %p2950_p0 = scmp.lt.s32.totalorder %s2948_s15, %s2942_s3 }
 0x33a   : > { %p2951_p1 = por %p2950_p0, %p2949_p8 }
 0x33c   : > { %p2952_p5 = pnand %p2951_p1, %p2945_p11 }
 0x33e   : > { %2955 = shalt.err (!%p2952_p5)
}
 0x33f   : > { %s2956_s4 = scalar_lea.hbm %s4793_s29, 8192  ;;  %s2960_s18 = scalar_lea.hbm %s4997_s27, 32768 }
 0x340   : > { %p2957_p7 = scmp.ne.s32.totalorder %s4793_s29, %s2956_s4  ;;  %p2961_p13 = scmp.lt.u32.totalorder %s4793_s29, %s4997_s27 }
 0x341   : > { %p2962_p6 = scmp.lt.u32.totalorder %s2960_s18, %s2956_s4  ;;  %p2964_p12 = scmp.lt.u32.totalorder %s2956_s4, %s4793_s29 }
 0x342   : > { %p2958_p10 = pnand %p2957_p7, %p4998_p3 }
 0x343   : > { %p2963_p4 = por %p2962_p6, %p2961_p13 }
 0x344   : > { %p2959_p9 = pneg %p2958_p10 }
 0x345   : > { %p2965_p2 = por %p2964_p12, %p2963_p4 }
 0x347   : > { %p2966_p11 = pnand %p2965_p2, %p2959_p9 }
 0x349   : > { %2969 = shalt.err (!%p2966_p11)
}
 0x34a   : > { %s3100_s30 = smov 256   ;;  %s3101_s24 = smov 512  }
 0x34b   : > { %s3102_s3 = smov 16  }
 0x34c   : > { %2587 = dma.vmem_to_hbm [thread:$0]  (%p4998_p3), %s4788_s23, 8192, %s4793_s29, %s4797_s26, %s3100_s30, %s3101_s24, %s3102_s3  }
 0x34d PF: > { %p2601_p8 = scmp.ge.s32.totalorder %s3092_s25, 2  ;;  %s2277_s22 = sand.u32 1, %s3040_s12  }
 0x34e   : > { %p4999_p0 = scmp.ne.s32.totalorder %s4913_s28, 0  ;;  %s2278_s11 = scalar_lea.sflag [#allocation5], %s2277_s22 }
 0x350   : > { %p2597_p1 = pnand %p2601_p8, %p4999_p0 }
 0x352   : > { %3035 = dma.done.wait (!%p2597_p1), %s2278_s11, 8192  }
 0x353   : > { %3037 = vsyncadd (!%p2597_p1), %s2278_s11, 4294959104  ;;  %s22_s25 = sadd.s32 1, %s3092_s25   ;;  %s5001_s21 = sld [smem:[#allocation12_spill]] }
 0x354   : > { %p4826_p5 = scmp.ge.s32.totalorder %s22_s25, 6   ;;  %s5002_s22 = sld [smem:[#allocation13_spill]] }
 0x355   : > { %s5003_s23 = sld [smem:[#allocation14_spill]]  ;;  %s5004_s24 = sld [smem:[#allocation15_spill]] }
 0x356   : > { %s5006_s12 = smov %s3044_s13  ;;  %s5007_s13 = smov %s3048_s14 }
 0x357   : > { %s5008_s14 = smov %s3315_s5  ;;  %s5009_s15 = smov %s3056_s16 }
 0x358   : > { %s5010_s16 = smov %s3060_s17  ;;  %s5011_s17 = smov %s3297_s6 }
 0x359   : > { %s5012_s18 = smov %s3068_s19  ;;  %s5013_s19 = smov %s3072_s20 }
 0x35a   : > { %s5014_s20 = smov %s3312_s0  ;;  %21 = sbr.rel (!%p4826_p5) target bundleno = 15 (0xf), region = 101 }
 0x361   :  { %2283 = vsyncpa [#allocation4], 1 }
 0x362   :  { %2285 = vsyncpa [#allocation4 + $0x1], 1 }
 0x363   :  { %2286 = vsyncpa [#allocation7], 1 }
 0x364   :  { %2288 = vsyncpa [#allocation7 + $0x1], 1 }
 0x365   :  { %2289 = vsyncpa [#allocation5], 1 }
 0x366   :  { %2291 = vsyncpa [#allocation5 + $0x1], 1 }

</bundles_post_ra>
